<compile_context>
chip_gen: v5e
topology: v5e:2x2
jax: 0.10.0
libtpu: 0.0.40
codegen_flags: <defaults>
</compile_context>

<pallas_src>
import functools

import jax
import jax.numpy as jnp
from jax import lax
from jax.experimental import pallas as pl
from jax.experimental.pallas import tpu as pltpu


# ----------------------------------------------------------------------------
# Fused Pallas kernel: all LSTM layers + FC head in one launch
# ----------------------------------------------------------------------------
def fused_battery_lstm_kernel(*refs, num_layers, hidden_size, batch_pad, seq_len):
    """refs layout:
        refs[0]                      x_ref   (T*B, D)     time-major, flattened
        refs[1 + 3l .. 3 + 3l]       per layer l:
                                       wih_ref (D_in, 4H)   W_ih^T (gates i,f,g,o on lanes)
                                       whh_ref (H, 4H)      W_hh^T
                                       b_ref   (1, 4H)      bias_ih + bias_hh
        refs[1 + 3L .. 4 + 3L]       w1_ref (H, 32), b1_ref (1, 32),
                                     w2_ref (32, out), b2_ref (1, out)
        refs[5 + 3L]                 o_ref  (B, out)      output
        refs[6 + 3L]                 gx_sc  (T*B, 4H) f32 hoisted gate projection
        refs[7 + 3L]                 seq_sc (T*B, H)  f32 inter-layer sequence
    Gate order (PyTorch): i, f, g, o along the lane axis.
    """
    H = hidden_size
    B = batch_pad          # padded to the f32 sublane tile (8)
    T = seq_len

    x_ref = refs[0]
    layer_refs = [tuple(refs[1 + 3 * l: 4 + 3 * l]) for l in range(num_layers)]
    base = 1 + 3 * num_layers
    w1_ref, b1_ref, w2_ref, b2_ref, o_ref, gx_sc, seq_sc = refs[base:base + 7]

    unroll = T if T <= 8 else 8          # bounded unroll: full only for short T

    # Lane mask for the g-gate group [2H, 3H); hoisted once (no per-step broadcast).
    lane = lax.broadcasted_iota(jnp.int32, (B, 4 * H), 1)
    g_mask = (lane >= 2 * H) & (lane < 3 * H)

    h_last = jnp.zeros((B, H), jnp.float32)
    for l in range(num_layers):
        wih_ref, whh_ref, b_ref = layer_refs[l]

        # ---- hoisted, lane-dense input projection (+ fused bias): 1 matmul ----
        # TODO(synk): inter-layer nn.Dropout is identity in inference mode.
        x_all = x_ref[...] if l == 0 else seq_sc[...]            # (T*B, D_in)
        gx_sc[...] = (jnp.dot(x_all, wih_ref[...],
                              preferred_element_type=jnp.float32)
                      + b_ref[...])                              # (T*B, 4H)

        whh = whh_ref[...]                                       # (H, 4H)
        write_seq = l < num_layers - 1                           # last layer: h only

        def step(t, carry, whh=whh, write_seq=write_seq):
            h, c = carry                                         # vreg-carried state
            row = pl.multiple_of(t * B, B)                       # aligned (8,128) slab
            pre = gx_sc[pl.ds(row, B), :] + jnp.dot(
                h, whh, preferred_element_type=jnp.float32)      # (B, 4H) lane-dense
            sig = jax.nn.sigmoid(pre)                            # full-block EUP
            tnh = jnp.tanh(pre)                                  # full-block EUP
            act = jnp.where(g_mask, tnh, sig)
            i_t = act[:, 0:H]
            f_t = act[:, H:2 * H]
            g_t = act[:, 2 * H:3 * H]
            o_t = act[:, 3 * H:4 * H]
            c_new = f_t * c + i_t * g_t
            h_new = o_t * jnp.tanh(c_new)
            if write_seq:
                seq_sc[pl.ds(row, B), :] = h_new                 # feed next layer
            return (h_new, c_new)

        h0 = jnp.zeros((B, H), jnp.float32)
        c0 = jnp.zeros((B, H), jnp.float32)
        h_last, _ = lax.fori_loop(0, T, step, (h0, c0), unroll=unroll)

    # ---- FC head: Linear(H,32) -> ReLU -> (Dropout: identity) -> Linear ----
    z = jnp.dot(h_last, w1_ref[...], preferred_element_type=jnp.float32) + b1_ref[...]
    z = jnp.maximum(z, 0.0)
    o_ref[...] = (jnp.dot(z, w2_ref[...], preferred_element_type=jnp.float32)
                  + b2_ref[...]).astype(o_ref.dtype)


# ----------------------------------------------------------------------------
# Wrappers (weights prepared once, outside the forward path)
# ----------------------------------------------------------------------------
_VMEM_SPEC = pl.BlockSpec(memory_space=pltpu.MemorySpace.VMEM)


def prepare_lstm_params(lstm_params):
    """PyTorch layout (wih(4H,D), whh(4H,H), bih(4H,), bhh(4H,)) per layer ->
       lane-dense, pre-transposed f32: (wih^T (D,4H), whh^T (H,4H), b (1,4H))."""
    prepped = []
    for (wih, whh, bih, bhh) in lstm_params:
        prepped.append((wih.T.astype(jnp.float32),
                        whh.T.astype(jnp.float32),
                        (bih + bhh)[None, :].astype(jnp.float32)))
    return prepped


def prepare_fc_params(fc_params):
    w1, b1, w2, b2 = fc_params
    return (w1.T.astype(jnp.float32), b1[None, :].astype(jnp.float32),
            w2.T.astype(jnp.float32), b2[None, :].astype(jnp.float32))


def battery_lstm_forward(x_btd, prep_lstm, prep_fc):
    """Pallas implementation of BatteryLSTM.forward (inference).

    x_btd: (B, T, input_size), batch_first as in PyTorch.
    prep_lstm / prep_fc: outputs of prepare_lstm_params / prepare_fc_params.
    """
    B, T, D = x_btd.shape
    num_layers = len(prep_lstm)
    H = prep_lstm[0][1].shape[0]              # whh^T is (H, 4H)
    out_size = prep_fc[2].shape[-1]

    # Pad batch to the f32 sublane tile (8); padded rows are discarded at the end.
    B_pad = max(8, ((B + 7) // 8) * 8)
    x_pad = jnp.zeros((B_pad, T, D), jnp.float32).at[:B].set(x_btd.astype(jnp.float32))
    # Time-major + flatten OUTSIDE the kernel: timestep t owns rows [t*B_pad, (t+1)*B_pad).
    x2d = jnp.transpose(x_pad, (1, 0, 2)).reshape(T * B_pad, D)

    flat_inputs = [x2d]
    for (wih_t, whh_t, b) in prep_lstm:
        flat_inputs += [wih_t, whh_t, b]
    flat_inputs += list(prep_fc)

    # Advisory cost estimate for XLA's scheduler.
    flops = 0
    for (wih_t, _, _) in prep_lstm:
        d_in = wih_t.shape[0]
        flops += 2 * T * B_pad * d_in * 4 * H      # hoisted x-projection
        flops += 2 * T * B_pad * H * 4 * H         # recurrent h-projection
    flops += 2 * B_pad * H * 32 + 2 * B_pad * 32 * out_size
    transcendentals = num_layers * T * B_pad * (2 * 4 * H + H)
    bytes_accessed = sum(int(a.size) * 4 for a in flat_inputs) + B_pad * out_size * 4

    kernel = functools.partial(fused_battery_lstm_kernel,
                               num_layers=num_layers, hidden_size=H,
                               batch_pad=B_pad, seq_len=T)

    out_pad = pl.pallas_call(
        kernel,
        out_shape=jax.ShapeDtypeStruct((B_pad, out_size), jnp.float32),
        in_specs=[_VMEM_SPEC] * len(flat_inputs),
        out_specs=_VMEM_SPEC,
        scratch_shapes=[
            pltpu.VMEM((T * B_pad, 4 * H), jnp.float32),   # hoisted gate projection
            pltpu.VMEM((T * B_pad, H), jnp.float32),       # inter-layer hidden sequence
        ],
        cost_estimate=pl.CostEstimate(flops=flops,
                                      transcendentals=transcendentals,
                                      bytes_accessed=bytes_accessed),
    )(*flat_inputs)
    return out_pad[:B]


# ----------------------------------------------------------------------------
# Pure-JAX reference (for correctness check)
# ----------------------------------------------------------------------------
def battery_lstm_ref(x_btd, lstm_params, fc_params):
    B, T, _ = x_btd.shape
    seq = x_btd.astype(jnp.float32)
    for (wih, whh, bih, bhh) in lstm_params:
        H = whh.shape[1]
        h = jnp.zeros((B, H), jnp.float32)
        c = jnp.zeros((B, H), jnp.float32)
        outs = []
        for t in range(T):
            g = seq[:, t, :] @ wih.T + h @ whh.T + bih + bhh
            i_g = jax.nn.sigmoid(g[:, :H])
            f_g = jax.nn.sigmoid(g[:, H:2 * H])
            g_g = jnp.tanh(g[:, 2 * H:3 * H])
            o_g = jax.nn.sigmoid(g[:, 3 * H:])
            c = f_g * c + i_g * g_g
            h = o_g * jnp.tanh(c)
            outs.append(h)
        seq = jnp.stack(outs, axis=1)
    h_last = seq[:, -1, :]
    w1, b1, w2, b2 = fc_params
    z = jnp.maximum(h_last @ w1.T + b1, 0.0)
    return z @ w2.T + b2


# ----------------------------------------------------------------------------
# Deterministic parameter construction + demo
# ----------------------------------------------------------------------------
def init_params(key, input_size, hidden_size, num_layers, output_size):
    H = hidden_size
    scale = 1.0 / jnp.sqrt(jnp.float32(H))
    lstm_params = []
    for layer in range(num_layers):
        d_in = input_size if layer == 0 else H
        key, k1, k2, k3, k4 = jax.random.split(key, 5)
        wih = jax.random.uniform(k1, (4 * H, d_in), jnp.float32, -scale, scale)
        whh = jax.random.uniform(k2, (4 * H, H), jnp.float32, -scale, scale)
        bih = jax.random.uniform(k3, (4 * H,), jnp.float32, -scale, scale)
        bhh = jax.random.uniform(k4, (4 * H,), jnp.float32, -scale, scale)
        lstm_params.append((wih, whh, bih, bhh))
    key, k1, k2, k3, k4 = jax.random.split(key, 5)
    w1 = jax.random.uniform(k1, (32, H), jnp.float32, -scale, scale)
    b1 = jax.random.uniform(k2, (32,), jnp.float32, -scale, scale)
    s2 = 1.0 / jnp.sqrt(jnp.float32(32))
    w2 = jax.random.uniform(k3, (output_size, 32), jnp.float32, -s2, s2)
    b2 = jax.random.uniform(k4, (output_size,), jnp.float32, -s2, s2)
    return lstm_params, (w1, b1, w2, b2)


if __name__ == "__main__":
    # Small, module-consistent shapes.
    input_size, hidden_size, num_layers, dropout, output_size = 4, 32, 2, 0.1, 1
    B, T = 2, 8

    key = jax.random.PRNGKey(0)
    key, kx = jax.random.split(key)
    x = jax.random.normal(kx, (B, T, input_size), jnp.float32)   # batch_first input

    lstm_params, fc_params = init_params(key, input_size, hidden_size,
                                         num_layers, output_size)

    # One-time weight preparation (pre-transpose / lane-stack gates / bias fuse).
    prep_lstm = prepare_lstm_params(lstm_params)
    prep_fc = prepare_fc_params(fc_params)

    out = battery_lstm_forward(x, prep_lstm, prep_fc)
    out = jax.block_until_ready(out)

    ref = battery_lstm_ref(x, lstm_params, fc_params)
    assert out.shape == (B, output_size), out.shape
    assert jnp.allclose(out, ref, atol=1e-4, rtol=1e-4), (out, ref)

    print("KERNEL_OK")
</pallas_src>

<mosaic_0001>
module attributes {stable_mosaic.version = 11 : i64} {
  func.func @fused_battery_lstm_kernel(%arg0: memref<64x4xf32, #tpu.memory_space<vmem>>, %arg1: memref<4x128xf32, #tpu.memory_space<vmem>>, %arg2: memref<32x128xf32, #tpu.memory_space<vmem>>, %arg3: memref<1x128xf32, #tpu.memory_space<vmem>>, %arg4: memref<32x128xf32, #tpu.memory_space<vmem>>, %arg5: memref<32x128xf32, #tpu.memory_space<vmem>>, %arg6: memref<1x128xf32, #tpu.memory_space<vmem>>, %arg7: memref<32x32xf32, #tpu.memory_space<vmem>>, %arg8: memref<1x32xf32, #tpu.memory_space<vmem>>, %arg9: memref<32x1xf32, #tpu.memory_space<vmem>>, %arg10: memref<1x1xf32, #tpu.memory_space<vmem>>, %arg11: memref<8x1xf32, #tpu.memory_space<vmem>>, %arg12: memref<64x128xf32, #tpu.memory_space<vmem>>, %arg13: memref<64x32xf32, #tpu.memory_space<vmem>>) attributes {dimension_semantics = [], scalar_prefetch = 0 : i64, scratch_operands = 2 : i64, tpu.core_type = #tpu.core_type<tc>} {
    %0 = tpu.iota {dimensions = array<i32: 1>} : vector<8x128xi32>
    %c64_i32 = arith.constant 64 : i32
    %1 = vector.broadcast %c64_i32 : i32 to vector<8x128xi32>
    %2 = arith.cmpi sge, %0, %1 : vector<8x128xi32>
    %c96_i32 = arith.constant 96 : i32
    %3 = vector.broadcast %c96_i32 : i32 to vector<8x128xi32>
    %4 = arith.cmpi slt, %0, %3 : vector<8x128xi32>
    %5 = arith.andi %2, %4 : vector<8x128xi1>
    %c0 = arith.constant 0 : index
    %c0_0 = arith.constant 0 : index
    %6 = vector.load %arg0[%c0, %c0_0] : memref<64x4xf32, #tpu.memory_space<vmem>>, vector<64x4xf32>
    %c0_1 = arith.constant 0 : index
    %c0_2 = arith.constant 0 : index
    %7 = vector.load %arg1[%c0_1, %c0_2] : memref<4x128xf32, #tpu.memory_space<vmem>>, vector<4x128xf32>
    %cst = arith.constant dense<0.000000e+00> : vector<64x128xf32>
    %8 = tpu.matmul %6, %7, %cst {dimension_numbers = #tpu.dot_dimension_numbers<[1], [0], [0], [1], [0, 0, 1, 1], [], []>} : vector<64x4xf32>, vector<4x128xf32>, vector<64x128xf32> -> vector<64x128xf32>
    %c0_3 = arith.constant 0 : index
    %c0_4 = arith.constant 0 : index
    %9 = vector.load %arg3[%c0_3, %c0_4] : memref<1x128xf32, #tpu.memory_space<vmem>>, vector<1x128xf32>
    %10 = vector.broadcast %9 : vector<1x128xf32> to vector<64x128xf32>
    %11 = arith.addf %8, %10 : vector<64x128xf32>
    %c0_5 = arith.constant 0 : index
    %c0_6 = arith.constant 0 : index
    %12 = vector.load %arg12[%c0_5, %c0_6] : memref<64x128xf32, #tpu.memory_space<vmem>>, vector<64x128xf32>
    tpu.vector_store %arg12[%c0_5, %c0_6], %11 {strides = array<i32>} : memref<64x128xf32, #tpu.memory_space<vmem>>, vector<64x128xf32>,
    %c0_7 = arith.constant 0 : index
    %c0_8 = arith.constant 0 : index
    %13 = vector.load %arg2[%c0_7, %c0_8] : memref<32x128xf32, #tpu.memory_space<vmem>>, vector<32x128xf32>
    %cst_9 = arith.constant 0.000000e+00 : f32
    %14 = vector.broadcast %cst_9 : f32 to vector<8x32xf32>
    %cst_10 = arith.constant 0.000000e+00 : f32
    %15 = vector.broadcast %cst_10 : f32 to vector<8x32xf32>
    %c0_i32 = arith.constant 0 : i32
    %c8_i32 = arith.constant 8 : i32
    %16 = arith.muli %c0_i32, %c8_i32 : i32
    %17 = tpu.assume_multiple %16, 8 : i32
    %18 = arith.index_cast %17 : i32 to index
    %c0_11 = arith.constant 0 : index
    %19 = vector.load %arg12[%18, %c0_11] : memref<64x128xf32, #tpu.memory_space<vmem>>, vector<8x128xf32>
    %cst_12 = arith.constant dense<0.000000e+00> : vector<8x128xf32>
    %20 = tpu.matmul %14, %13, %cst_12 {dimension_numbers = #tpu.dot_dimension_numbers<[1], [0], [0], [1], [0, 0, 1, 1], [], []>} : vector<8x32xf32>, vector<32x128xf32>, vector<8x128xf32> -> vector<8x128xf32>
    %21 = arith.addf %19, %20 : vector<8x128xf32>
    %22 = arith.negf %21 : vector<8x128xf32>
    %23 = math.exp %22 : vector<8x128xf32>
    %cst_13 = arith.constant 1.000000e+00 : f32
    %24 = vector.broadcast %cst_13 : f32 to vector<8x128xf32>
    %25 = arith.addf %24, %23 : vector<8x128xf32>
    %26 = arith.divf %24, %25 : vector<8x128xf32>
    %27 = math.tanh %21 : vector<8x128xf32>
    %28 = arith.select %5, %27, %26 : vector<8x128xi1>, vector<8x128xf32>
    %29 = vector.extract_strided_slice %28 {offsets = [0, 0], sizes = [8, 32], strides = [1, 1]} : vector<8x128xf32> to vector<8x32xf32>
    %30 = vector.extract_strided_slice %28 {offsets = [0, 32], sizes = [8, 32], strides = [1, 1]} : vector<8x128xf32> to vector<8x32xf32>
    %31 = vector.extract_strided_slice %28 {offsets = [0, 64], sizes = [8, 32], strides = [1, 1]} : vector<8x128xf32> to vector<8x32xf32>
    %32 = vector.extract_strided_slice %28 {offsets = [0, 96], sizes = [8, 32], strides = [1, 1]} : vector<8x128xf32> to vector<8x32xf32>
    %33 = arith.mulf %30, %15 : vector<8x32xf32>
    %34 = arith.mulf %29, %31 : vector<8x32xf32>
    %35 = arith.addf %33, %34 : vector<8x32xf32>
    %36 = math.tanh %35 : vector<8x32xf32>
    %37 = arith.mulf %32, %36 : vector<8x32xf32>
    %38 = arith.index_cast %17 : i32 to index
    %c0_14 = arith.constant 0 : index
    %39 = vector.load %arg13[%38, %c0_14] : memref<64x32xf32, #tpu.memory_space<vmem>>, vector<8x32xf32>
    tpu.vector_store %arg13[%38, %c0_14], %37 {strides = array<i32>} : memref<64x32xf32, #tpu.memory_space<vmem>>, vector<8x32xf32>,
    %c1_i32 = arith.constant 1 : i32
    %c8_i32_15 = arith.constant 8 : i32
    %40 = arith.muli %c1_i32, %c8_i32_15 : i32
    %41 = tpu.assume_multiple %40, 8 : i32
    %42 = arith.index_cast %41 : i32 to index
    %c0_16 = arith.constant 0 : index
    %43 = vector.load %arg12[%42, %c0_16] : memref<64x128xf32, #tpu.memory_space<vmem>>, vector<8x128xf32>
    %cst_17 = arith.constant dense<0.000000e+00> : vector<8x128xf32>
    %44 = tpu.matmul %37, %13, %cst_17 {dimension_numbers = #tpu.dot_dimension_numbers<[1], [0], [0], [1], [0, 0, 1, 1], [], []>} : vector<8x32xf32>, vector<32x128xf32>, vector<8x128xf32> -> vector<8x128xf32>
    %45 = arith.addf %43, %44 : vector<8x128xf32>
    %46 = arith.negf %45 : vector<8x128xf32>
    %47 = math.exp %46 : vector<8x128xf32>
    %cst_18 = arith.constant 1.000000e+00 : f32
    %48 = vector.broadcast %cst_18 : f32 to vector<8x128xf32>
    %49 = arith.addf %48, %47 : vector<8x128xf32>
    %50 = arith.divf %48, %49 : vector<8x128xf32>
    %51 = math.tanh %45 : vector<8x128xf32>
    %52 = arith.select %5, %51, %50 : vector<8x128xi1>, vector<8x128xf32>
    %53 = vector.extract_strided_slice %52 {offsets = [0, 0], sizes = [8, 32], strides = [1, 1]} : vector<8x128xf32> to vector<8x32xf32>
    %54 = vector.extract_strided_slice %52 {offsets = [0, 32], sizes = [8, 32], strides = [1, 1]} : vector<8x128xf32> to vector<8x32xf32>
    %55 = vector.extract_strided_slice %52 {offsets = [0, 64], sizes = [8, 32], strides = [1, 1]} : vector<8x128xf32> to vector<8x32xf32>
    %56 = vector.extract_strided_slice %52 {offsets = [0, 96], sizes = [8, 32], strides = [1, 1]} : vector<8x128xf32> to vector<8x32xf32>
    %57 = arith.mulf %54, %35 : vector<8x32xf32>
    %58 = arith.mulf %53, %55 : vector<8x32xf32>
    %59 = arith.addf %57, %58 : vector<8x32xf32>
    %60 = math.tanh %59 : vector<8x32xf32>
    %61 = arith.mulf %56, %60 : vector<8x32xf32>
    %62 = arith.index_cast %41 : i32 to index
    %c0_19 = arith.constant 0 : index
    %63 = vector.load %arg13[%62, %c0_19] : memref<64x32xf32, #tpu.memory_space<vmem>>, vector<8x32xf32>
    tpu.vector_store %arg13[%62, %c0_19], %61 {strides = array<i32>} : memref<64x32xf32, #tpu.memory_space<vmem>>, vector<8x32xf32>,
    %c2_i32 = arith.constant 2 : i32
    %c8_i32_20 = arith.constant 8 : i32
    %64 = arith.muli %c2_i32, %c8_i32_20 : i32
    %65 = tpu.assume_multiple %64, 8 : i32
    %66 = arith.index_cast %65 : i32 to index
    %c0_21 = arith.constant 0 : index
    %67 = vector.load %arg12[%66, %c0_21] : memref<64x128xf32, #tpu.memory_space<vmem>>, vector<8x128xf32>
    %cst_22 = arith.constant dense<0.000000e+00> : vector<8x128xf32>
    %68 = tpu.matmul %61, %13, %cst_22 {dimension_numbers = #tpu.dot_dimension_numbers<[1], [0], [0], [1], [0, 0, 1, 1], [], []>} : vector<8x32xf32>, vector<32x128xf32>, vector<8x128xf32> -> vector<8x128xf32>
    %69 = arith.addf %67, %68 : vector<8x128xf32>
    %70 = arith.negf %69 : vector<8x128xf32>
    %71 = math.exp %70 : vector<8x128xf32>
    %cst_23 = arith.constant 1.000000e+00 : f32
    %72 = vector.broadcast %cst_23 : f32 to vector<8x128xf32>
    %73 = arith.addf %72, %71 : vector<8x128xf32>
    %74 = arith.divf %72, %73 : vector<8x128xf32>
    %75 = math.tanh %69 : vector<8x128xf32>
    %76 = arith.select %5, %75, %74 : vector<8x128xi1>, vector<8x128xf32>
    %77 = vector.extract_strided_slice %76 {offsets = [0, 0], sizes = [8, 32], strides = [1, 1]} : vector<8x128xf32> to vector<8x32xf32>
    %78 = vector.extract_strided_slice %76 {offsets = [0, 32], sizes = [8, 32], strides = [1, 1]} : vector<8x128xf32> to vector<8x32xf32>
    %79 = vector.extract_strided_slice %76 {offsets = [0, 64], sizes = [8, 32], strides = [1, 1]} : vector<8x128xf32> to vector<8x32xf32>
    %80 = vector.extract_strided_slice %76 {offsets = [0, 96], sizes = [8, 32], strides = [1, 1]} : vector<8x128xf32> to vector<8x32xf32>
    %81 = arith.mulf %78, %59 : vector<8x32xf32>
    %82 = arith.mulf %77, %79 : vector<8x32xf32>
    %83 = arith.addf %81, %82 : vector<8x32xf32>
    %84 = math.tanh %83 : vector<8x32xf32>
    %85 = arith.mulf %80, %84 : vector<8x32xf32>
    %86 = arith.index_cast %65 : i32 to index
    %c0_24 = arith.constant 0 : index
    %87 = vector.load %arg13[%86, %c0_24] : memref<64x32xf32, #tpu.memory_space<vmem>>, vector<8x32xf32>
    tpu.vector_store %arg13[%86, %c0_24], %85 {strides = array<i32>} : memref<64x32xf32, #tpu.memory_space<vmem>>, vector<8x32xf32>,
    %c3_i32 = arith.constant 3 : i32
    %c8_i32_25 = arith.constant 8 : i32
    %88 = arith.muli %c3_i32, %c8_i32_25 : i32
    %89 = tpu.assume_multiple %88, 8 : i32
    %90 = arith.index_cast %89 : i32 to index
    %c0_26 = arith.constant 0 : index
    %91 = vector.load %arg12[%90, %c0_26] : memref<64x128xf32, #tpu.memory_space<vmem>>, vector<8x128xf32>
    %cst_27 = arith.constant dense<0.000000e+00> : vector<8x128xf32>
    %92 = tpu.matmul %85, %13, %cst_27 {dimension_numbers = #tpu.dot_dimension_numbers<[1], [0], [0], [1], [0, 0, 1, 1], [], []>} : vector<8x32xf32>, vector<32x128xf32>, vector<8x128xf32> -> vector<8x128xf32>
    %93 = arith.addf %91, %92 : vector<8x128xf32>
    %94 = arith.negf %93 : vector<8x128xf32>
    %95 = math.exp %94 : vector<8x128xf32>
    %cst_28 = arith.constant 1.000000e+00 : f32
    %96 = vector.broadcast %cst_28 : f32 to vector<8x128xf32>
    %97 = arith.addf %96, %95 : vector<8x128xf32>
    %98 = arith.divf %96, %97 : vector<8x128xf32>
    %99 = math.tanh %93 : vector<8x128xf32>
    %100 = arith.select %5, %99, %98 : vector<8x128xi1>, vector<8x128xf32>
    %101 = vector.extract_strided_slice %100 {offsets = [0, 0], sizes = [8, 32], strides = [1, 1]} : vector<8x128xf32> to vector<8x32xf32>
    %102 = vector.extract_strided_slice %100 {offsets = [0, 32], sizes = [8, 32], strides = [1, 1]} : vector<8x128xf32> to vector<8x32xf32>
    %103 = vector.extract_strided_slice %100 {offsets = [0, 64], sizes = [8, 32], strides = [1, 1]} : vector<8x128xf32> to vector<8x32xf32>
    %104 = vector.extract_strided_slice %100 {offsets = [0, 96], sizes = [8, 32], strides = [1, 1]} : vector<8x128xf32> to vector<8x32xf32>
    %105 = arith.mulf %102, %83 : vector<8x32xf32>
    %106 = arith.mulf %101, %103 : vector<8x32xf32>
    %107 = arith.addf %105, %106 : vector<8x32xf32>
    %108 = math.tanh %107 : vector<8x32xf32>
    %109 = arith.mulf %104, %108 : vector<8x32xf32>
    %110 = arith.index_cast %89 : i32 to index
    %c0_29 = arith.constant 0 : index
    %111 = vector.load %arg13[%110, %c0_29] : memref<64x32xf32, #tpu.memory_space<vmem>>, vector<8x32xf32>
    tpu.vector_store %arg13[%110, %c0_29], %109 {strides = array<i32>} : memref<64x32xf32, #tpu.memory_space<vmem>>, vector<8x32xf32>,
    %c4_i32 = arith.constant 4 : i32
    %c8_i32_30 = arith.constant 8 : i32
    %112 = arith.muli %c4_i32, %c8_i32_30 : i32
    %113 = tpu.assume_multiple %112, 8 : i32
    %114 = arith.index_cast %113 : i32 to index
    %c0_31 = arith.constant 0 : index
    %115 = vector.load %arg12[%114, %c0_31] : memref<64x128xf32, #tpu.memory_space<vmem>>, vector<8x128xf32>
    %cst_32 = arith.constant dense<0.000000e+00> : vector<8x128xf32>
    %116 = tpu.matmul %109, %13, %cst_32 {dimension_numbers = #tpu.dot_dimension_numbers<[1], [0], [0], [1], [0, 0, 1, 1], [], []>} : vector<8x32xf32>, vector<32x128xf32>, vector<8x128xf32> -> vector<8x128xf32>
    %117 = arith.addf %115, %116 : vector<8x128xf32>
    %118 = arith.negf %117 : vector<8x128xf32>
    %119 = math.exp %118 : vector<8x128xf32>
    %cst_33 = arith.constant 1.000000e+00 : f32
    %120 = vector.broadcast %cst_33 : f32 to vector<8x128xf32>
    %121 = arith.addf %120, %119 : vector<8x128xf32>
    %122 = arith.divf %120, %121 : vector<8x128xf32>
    %123 = math.tanh %117 : vector<8x128xf32>
    %124 = arith.select %5, %123, %122 : vector<8x128xi1>, vector<8x128xf32>
    %125 = vector.extract_strided_slice %124 {offsets = [0, 0], sizes = [8, 32], strides = [1, 1]} : vector<8x128xf32> to vector<8x32xf32>
    %126 = vector.extract_strided_slice %124 {offsets = [0, 32], sizes = [8, 32], strides = [1, 1]} : vector<8x128xf32> to vector<8x32xf32>
    %127 = vector.extract_strided_slice %124 {offsets = [0, 64], sizes = [8, 32], strides = [1, 1]} : vector<8x128xf32> to vector<8x32xf32>
    %128 = vector.extract_strided_slice %124 {offsets = [0, 96], sizes = [8, 32], strides = [1, 1]} : vector<8x128xf32> to vector<8x32xf32>
    %129 = arith.mulf %126, %107 : vector<8x32xf32>
    %130 = arith.mulf %125, %127 : vector<8x32xf32>
    %131 = arith.addf %129, %130 : vector<8x32xf32>
    %132 = math.tanh %131 : vector<8x32xf32>
    %133 = arith.mulf %128, %132 : vector<8x32xf32>
    %134 = arith.index_cast %113 : i32 to index
    %c0_34 = arith.constant 0 : index
    %135 = vector.load %arg13[%134, %c0_34] : memref<64x32xf32, #tpu.memory_space<vmem>>, vector<8x32xf32>
    tpu.vector_store %arg13[%134, %c0_34], %133 {strides = array<i32>} : memref<64x32xf32, #tpu.memory_space<vmem>>, vector<8x32xf32>,
    %c5_i32 = arith.constant 5 : i32
    %c8_i32_35 = arith.constant 8 : i32
    %136 = arith.muli %c5_i32, %c8_i32_35 : i32
    %137 = tpu.assume_multiple %136, 8 : i32
    %138 = arith.index_cast %137 : i32 to index
    %c0_36 = arith.constant 0 : index
    %139 = vector.load %arg12[%138, %c0_36] : memref<64x128xf32, #tpu.memory_space<vmem>>, vector<8x128xf32>
    %cst_37 = arith.constant dense<0.000000e+00> : vector<8x128xf32>
    %140 = tpu.matmul %133, %13, %cst_37 {dimension_numbers = #tpu.dot_dimension_numbers<[1], [0], [0], [1], [0, 0, 1, 1], [], []>} : vector<8x32xf32>, vector<32x128xf32>, vector<8x128xf32> -> vector<8x128xf32>
    %141 = arith.addf %139, %140 : vector<8x128xf32>
    %142 = arith.negf %141 : vector<8x128xf32>
    %143 = math.exp %142 : vector<8x128xf32>
    %cst_38 = arith.constant 1.000000e+00 : f32
    %144 = vector.broadcast %cst_38 : f32 to vector<8x128xf32>
    %145 = arith.addf %144, %143 : vector<8x128xf32>
    %146 = arith.divf %144, %145 : vector<8x128xf32>
    %147 = math.tanh %141 : vector<8x128xf32>
    %148 = arith.select %5, %147, %146 : vector<8x128xi1>, vector<8x128xf32>
    %149 = vector.extract_strided_slice %148 {offsets = [0, 0], sizes = [8, 32], strides = [1, 1]} : vector<8x128xf32> to vector<8x32xf32>
    %150 = vector.extract_strided_slice %148 {offsets = [0, 32], sizes = [8, 32], strides = [1, 1]} : vector<8x128xf32> to vector<8x32xf32>
    %151 = vector.extract_strided_slice %148 {offsets = [0, 64], sizes = [8, 32], strides = [1, 1]} : vector<8x128xf32> to vector<8x32xf32>
    %152 = vector.extract_strided_slice %148 {offsets = [0, 96], sizes = [8, 32], strides = [1, 1]} : vector<8x128xf32> to vector<8x32xf32>
    %153 = arith.mulf %150, %131 : vector<8x32xf32>
    %154 = arith.mulf %149, %151 : vector<8x32xf32>
    %155 = arith.addf %153, %154 : vector<8x32xf32>
    %156 = math.tanh %155 : vector<8x32xf32>
    %157 = arith.mulf %152, %156 : vector<8x32xf32>
    %158 = arith.index_cast %137 : i32 to index
    %c0_39 = arith.constant 0 : index
    %159 = vector.load %arg13[%158, %c0_39] : memref<64x32xf32, #tpu.memory_space<vmem>>, vector<8x32xf32>
    tpu.vector_store %arg13[%158, %c0_39], %157 {strides = array<i32>} : memref<64x32xf32, #tpu.memory_space<vmem>>, vector<8x32xf32>,
    %c6_i32 = arith.constant 6 : i32
    %c8_i32_40 = arith.constant 8 : i32
    %160 = arith.muli %c6_i32, %c8_i32_40 : i32
    %161 = tpu.assume_multiple %160, 8 : i32
    %162 = arith.index_cast %161 : i32 to index
    %c0_41 = arith.constant 0 : index
    %163 = vector.load %arg12[%162, %c0_41] : memref<64x128xf32, #tpu.memory_space<vmem>>, vector<8x128xf32>
    %cst_42 = arith.constant dense<0.000000e+00> : vector<8x128xf32>
    %164 = tpu.matmul %157, %13, %cst_42 {dimension_numbers = #tpu.dot_dimension_numbers<[1], [0], [0], [1], [0, 0, 1, 1], [], []>} : vector<8x32xf32>, vector<32x128xf32>, vector<8x128xf32> -> vector<8x128xf32>
    %165 = arith.addf %163, %164 : vector<8x128xf32>
    %166 = arith.negf %165 : vector<8x128xf32>
    %167 = math.exp %166 : vector<8x128xf32>
    %cst_43 = arith.constant 1.000000e+00 : f32
    %168 = vector.broadcast %cst_43 : f32 to vector<8x128xf32>
    %169 = arith.addf %168, %167 : vector<8x128xf32>
    %170 = arith.divf %168, %169 : vector<8x128xf32>
    %171 = math.tanh %165 : vector<8x128xf32>
    %172 = arith.select %5, %171, %170 : vector<8x128xi1>, vector<8x128xf32>
    %173 = vector.extract_strided_slice %172 {offsets = [0, 0], sizes = [8, 32], strides = [1, 1]} : vector<8x128xf32> to vector<8x32xf32>
    %174 = vector.extract_strided_slice %172 {offsets = [0, 32], sizes = [8, 32], strides = [1, 1]} : vector<8x128xf32> to vector<8x32xf32>
    %175 = vector.extract_strided_slice %172 {offsets = [0, 64], sizes = [8, 32], strides = [1, 1]} : vector<8x128xf32> to vector<8x32xf32>
    %176 = vector.extract_strided_slice %172 {offsets = [0, 96], sizes = [8, 32], strides = [1, 1]} : vector<8x128xf32> to vector<8x32xf32>
    %177 = arith.mulf %174, %155 : vector<8x32xf32>
    %178 = arith.mulf %173, %175 : vector<8x32xf32>
    %179 = arith.addf %177, %178 : vector<8x32xf32>
    %180 = math.tanh %179 : vector<8x32xf32>
    %181 = arith.mulf %176, %180 : vector<8x32xf32>
    %182 = arith.index_cast %161 : i32 to index
    %c0_44 = arith.constant 0 : index
    %183 = vector.load %arg13[%182, %c0_44] : memref<64x32xf32, #tpu.memory_space<vmem>>, vector<8x32xf32>
    tpu.vector_store %arg13[%182, %c0_44], %181 {strides = array<i32>} : memref<64x32xf32, #tpu.memory_space<vmem>>, vector<8x32xf32>,
    %c7_i32 = arith.constant 7 : i32
    %c8_i32_45 = arith.constant 8 : i32
    %184 = arith.muli %c7_i32, %c8_i32_45 : i32
    %185 = tpu.assume_multiple %184, 8 : i32
    %186 = arith.index_cast %185 : i32 to index
    %c0_46 = arith.constant 0 : index
    %187 = vector.load %arg12[%186, %c0_46] : memref<64x128xf32, #tpu.memory_space<vmem>>, vector<8x128xf32>
    %cst_47 = arith.constant dense<0.000000e+00> : vector<8x128xf32>
    %188 = tpu.matmul %181, %13, %cst_47 {dimension_numbers = #tpu.dot_dimension_numbers<[1], [0], [0], [1], [0, 0, 1, 1], [], []>} : vector<8x32xf32>, vector<32x128xf32>, vector<8x128xf32> -> vector<8x128xf32>
    %189 = arith.addf %187, %188 : vector<8x128xf32>
    %190 = arith.negf %189 : vector<8x128xf32>
    %191 = math.exp %190 : vector<8x128xf32>
    %cst_48 = arith.constant 1.000000e+00 : f32
    %192 = vector.broadcast %cst_48 : f32 to vector<8x128xf32>
    %193 = arith.addf %192, %191 : vector<8x128xf32>
    %194 = arith.divf %192, %193 : vector<8x128xf32>
    %195 = math.tanh %189 : vector<8x128xf32>
    %196 = arith.select %5, %195, %194 : vector<8x128xi1>, vector<8x128xf32>
    %197 = vector.extract_strided_slice %196 {offsets = [0, 0], sizes = [8, 32], strides = [1, 1]} : vector<8x128xf32> to vector<8x32xf32>
    %198 = vector.extract_strided_slice %196 {offsets = [0, 32], sizes = [8, 32], strides = [1, 1]} : vector<8x128xf32> to vector<8x32xf32>
    %199 = vector.extract_strided_slice %196 {offsets = [0, 64], sizes = [8, 32], strides = [1, 1]} : vector<8x128xf32> to vector<8x32xf32>
    %200 = vector.extract_strided_slice %196 {offsets = [0, 96], sizes = [8, 32], strides = [1, 1]} : vector<8x128xf32> to vector<8x32xf32>
    %201 = arith.mulf %198, %179 : vector<8x32xf32>
    %202 = arith.mulf %197, %199 : vector<8x32xf32>
    %203 = arith.addf %201, %202 : vector<8x32xf32>
    %204 = math.tanh %203 : vector<8x32xf32>
    %205 = arith.mulf %200, %204 : vector<8x32xf32>
    %206 = arith.index_cast %185 : i32 to index
    %c0_49 = arith.constant 0 : index
    %207 = vector.load %arg13[%206, %c0_49] : memref<64x32xf32, #tpu.memory_space<vmem>>, vector<8x32xf32>
    tpu.vector_store %arg13[%206, %c0_49], %205 {strides = array<i32>} : memref<64x32xf32, #tpu.memory_space<vmem>>, vector<8x32xf32>,
    %c8_i32_50 = arith.constant 8 : i32
    %c0_51 = arith.constant 0 : index
    %c0_52 = arith.constant 0 : index
    %208 = vector.load %arg13[%c0_51, %c0_52] : memref<64x32xf32, #tpu.memory_space<vmem>>, vector<64x32xf32>
    %c0_53 = arith.constant 0 : index
    %c0_54 = arith.constant 0 : index
    %209 = vector.load %arg4[%c0_53, %c0_54] : memref<32x128xf32, #tpu.memory_space<vmem>>, vector<32x128xf32>
    %cst_55 = arith.constant dense<0.000000e+00> : vector<64x128xf32>
    %210 = tpu.matmul %208, %209, %cst_55 {dimension_numbers = #tpu.dot_dimension_numbers<[1], [0], [0], [1], [0, 0, 1, 1], [], []>} : vector<64x32xf32>, vector<32x128xf32>, vector<64x128xf32> -> vector<64x128xf32>
    %c0_56 = arith.constant 0 : index
    %c0_57 = arith.constant 0 : index
    %211 = vector.load %arg6[%c0_56, %c0_57] : memref<1x128xf32, #tpu.memory_space<vmem>>, vector<1x128xf32>
    %212 = vector.broadcast %211 : vector<1x128xf32> to vector<64x128xf32>
    %213 = arith.addf %210, %212 : vector<64x128xf32>
    %c0_58 = arith.constant 0 : index
    %c0_59 = arith.constant 0 : index
    %214 = vector.load %arg12[%c0_58, %c0_59] : memref<64x128xf32, #tpu.memory_space<vmem>>, vector<64x128xf32>
    tpu.vector_store %arg12[%c0_58, %c0_59], %213 {strides = array<i32>} : memref<64x128xf32, #tpu.memory_space<vmem>>, vector<64x128xf32>,
    %c0_60 = arith.constant 0 : index
    %c0_61 = arith.constant 0 : index
    %215 = vector.load %arg5[%c0_60, %c0_61] : memref<32x128xf32, #tpu.memory_space<vmem>>, vector<32x128xf32>
    %cst_62 = arith.constant 0.000000e+00 : f32
    %216 = vector.broadcast %cst_62 : f32 to vector<8x32xf32>
    %cst_63 = arith.constant 0.000000e+00 : f32
    %217 = vector.broadcast %cst_63 : f32 to vector<8x32xf32>
    %c0_i32_64 = arith.constant 0 : i32
    %c8_i32_65 = arith.constant 8 : i32
    %218 = arith.muli %c0_i32_64, %c8_i32_65 : i32
    %219 = tpu.assume_multiple %218, 8 : i32
    %220 = arith.index_cast %219 : i32 to index
    %c0_66 = arith.constant 0 : index
    %221 = vector.load %arg12[%220, %c0_66] : memref<64x128xf32, #tpu.memory_space<vmem>>, vector<8x128xf32>
    %cst_67 = arith.constant dense<0.000000e+00> : vector<8x128xf32>
    %222 = tpu.matmul %216, %215, %cst_67 {dimension_numbers = #tpu.dot_dimension_numbers<[1], [0], [0], [1], [0, 0, 1, 1], [], []>} : vector<8x32xf32>, vector<32x128xf32>, vector<8x128xf32> -> vector<8x128xf32>
    %223 = arith.addf %221, %222 : vector<8x128xf32>
    %224 = arith.negf %223 : vector<8x128xf32>
    %225 = math.exp %224 : vector<8x128xf32>
    %cst_68 = arith.constant 1.000000e+00 : f32
    %226 = vector.broadcast %cst_68 : f32 to vector<8x128xf32>
    %227 = arith.addf %226, %225 : vector<8x128xf32>
    %228 = arith.divf %226, %227 : vector<8x128xf32>
    %229 = math.tanh %223 : vector<8x128xf32>
    %230 = arith.select %5, %229, %228 : vector<8x128xi1>, vector<8x128xf32>
    %231 = vector.extract_strided_slice %230 {offsets = [0, 0], sizes = [8, 32], strides = [1, 1]} : vector<8x128xf32> to vector<8x32xf32>
    %232 = vector.extract_strided_slice %230 {offsets = [0, 32], sizes = [8, 32], strides = [1, 1]} : vector<8x128xf32> to vector<8x32xf32>
    %233 = vector.extract_strided_slice %230 {offsets = [0, 64], sizes = [8, 32], strides = [1, 1]} : vector<8x128xf32> to vector<8x32xf32>
    %234 = vector.extract_strided_slice %230 {offsets = [0, 96], sizes = [8, 32], strides = [1, 1]} : vector<8x128xf32> to vector<8x32xf32>
    %235 = arith.mulf %232, %217 : vector<8x32xf32>
    %236 = arith.mulf %231, %233 : vector<8x32xf32>
    %237 = arith.addf %235, %236 : vector<8x32xf32>
    %238 = math.tanh %237 : vector<8x32xf32>
    %239 = arith.mulf %234, %238 : vector<8x32xf32>
    %c1_i32_69 = arith.constant 1 : i32
    %c8_i32_70 = arith.constant 8 : i32
    %240 = arith.muli %c1_i32_69, %c8_i32_70 : i32
    %241 = tpu.assume_multiple %240, 8 : i32
    %242 = arith.index_cast %241 : i32 to index
    %c0_71 = arith.constant 0 : index
    %243 = vector.load %arg12[%242, %c0_71] : memref<64x128xf32, #tpu.memory_space<vmem>>, vector<8x128xf32>
    %cst_72 = arith.constant dense<0.000000e+00> : vector<8x128xf32>
    %244 = tpu.matmul %239, %215, %cst_72 {dimension_numbers = #tpu.dot_dimension_numbers<[1], [0], [0], [1], [0, 0, 1, 1], [], []>} : vector<8x32xf32>, vector<32x128xf32>, vector<8x128xf32> -> vector<8x128xf32>
    %245 = arith.addf %243, %244 : vector<8x128xf32>
    %246 = arith.negf %245 : vector<8x128xf32>
    %247 = math.exp %246 : vector<8x128xf32>
    %cst_73 = arith.constant 1.000000e+00 : f32
    %248 = vector.broadcast %cst_73 : f32 to vector<8x128xf32>
    %249 = arith.addf %248, %247 : vector<8x128xf32>
    %250 = arith.divf %248, %249 : vector<8x128xf32>
    %251 = math.tanh %245 : vector<8x128xf32>
    %252 = arith.select %5, %251, %250 : vector<8x128xi1>, vector<8x128xf32>
    %253 = vector.extract_strided_slice %252 {offsets = [0, 0], sizes = [8, 32], strides = [1, 1]} : vector<8x128xf32> to vector<8x32xf32>
    %254 = vector.extract_strided_slice %252 {offsets = [0, 32], sizes = [8, 32], strides = [1, 1]} : vector<8x128xf32> to vector<8x32xf32>
    %255 = vector.extract_strided_slice %252 {offsets = [0, 64], sizes = [8, 32], strides = [1, 1]} : vector<8x128xf32> to vector<8x32xf32>
    %256 = vector.extract_strided_slice %252 {offsets = [0, 96], sizes = [8, 32], strides = [1, 1]} : vector<8x128xf32> to vector<8x32xf32>
    %257 = arith.mulf %254, %237 : vector<8x32xf32>
    %258 = arith.mulf %253, %255 : vector<8x32xf32>
    %259 = arith.addf %257, %258 : vector<8x32xf32>
    %260 = math.tanh %259 : vector<8x32xf32>
    %261 = arith.mulf %256, %260 : vector<8x32xf32>
    %c2_i32_74 = arith.constant 2 : i32
    %c8_i32_75 = arith.constant 8 : i32
    %262 = arith.muli %c2_i32_74, %c8_i32_75 : i32
    %263 = tpu.assume_multiple %262, 8 : i32
    %264 = arith.index_cast %263 : i32 to index
    %c0_76 = arith.constant 0 : index
    %265 = vector.load %arg12[%264, %c0_76] : memref<64x128xf32, #tpu.memory_space<vmem>>, vector<8x128xf32>
    %cst_77 = arith.constant dense<0.000000e+00> : vector<8x128xf32>
    %266 = tpu.matmul %261, %215, %cst_77 {dimension_numbers = #tpu.dot_dimension_numbers<[1], [0], [0], [1], [0, 0, 1, 1], [], []>} : vector<8x32xf32>, vector<32x128xf32>, vector<8x128xf32> -> vector<8x128xf32>
    %267 = arith.addf %265, %266 : vector<8x128xf32>
    %268 = arith.negf %267 : vector<8x128xf32>
    %269 = math.exp %268 : vector<8x128xf32>
    %cst_78 = arith.constant 1.000000e+00 : f32
    %270 = vector.broadcast %cst_78 : f32 to vector<8x128xf32>
    %271 = arith.addf %270, %269 : vector<8x128xf32>
    %272 = arith.divf %270, %271 : vector<8x128xf32>
    %273 = math.tanh %267 : vector<8x128xf32>
    %274 = arith.select %5, %273, %272 : vector<8x128xi1>, vector<8x128xf32>
    %275 = vector.extract_strided_slice %274 {offsets = [0, 0], sizes = [8, 32], strides = [1, 1]} : vector<8x128xf32> to vector<8x32xf32>
    %276 = vector.extract_strided_slice %274 {offsets = [0, 32], sizes = [8, 32], strides = [1, 1]} : vector<8x128xf32> to vector<8x32xf32>
    %277 = vector.extract_strided_slice %274 {offsets = [0, 64], sizes = [8, 32], strides = [1, 1]} : vector<8x128xf32> to vector<8x32xf32>
    %278 = vector.extract_strided_slice %274 {offsets = [0, 96], sizes = [8, 32], strides = [1, 1]} : vector<8x128xf32> to vector<8x32xf32>
    %279 = arith.mulf %276, %259 : vector<8x32xf32>
    %280 = arith.mulf %275, %277 : vector<8x32xf32>
    %281 = arith.addf %279, %280 : vector<8x32xf32>
    %282 = math.tanh %281 : vector<8x32xf32>
    %283 = arith.mulf %278, %282 : vector<8x32xf32>
    %c3_i32_79 = arith.constant 3 : i32
    %c8_i32_80 = arith.constant 8 : i32
    %284 = arith.muli %c3_i32_79, %c8_i32_80 : i32
    %285 = tpu.assume_multiple %284, 8 : i32
    %286 = arith.index_cast %285 : i32 to index
    %c0_81 = arith.constant 0 : index
    %287 = vector.load %arg12[%286, %c0_81] : memref<64x128xf32, #tpu.memory_space<vmem>>, vector<8x128xf32>
    %cst_82 = arith.constant dense<0.000000e+00> : vector<8x128xf32>
    %288 = tpu.matmul %283, %215, %cst_82 {dimension_numbers = #tpu.dot_dimension_numbers<[1], [0], [0], [1], [0, 0, 1, 1], [], []>} : vector<8x32xf32>, vector<32x128xf32>, vector<8x128xf32> -> vector<8x128xf32>
    %289 = arith.addf %287, %288 : vector<8x128xf32>
    %290 = arith.negf %289 : vector<8x128xf32>
    %291 = math.exp %290 : vector<8x128xf32>
    %cst_83 = arith.constant 1.000000e+00 : f32
    %292 = vector.broadcast %cst_83 : f32 to vector<8x128xf32>
    %293 = arith.addf %292, %291 : vector<8x128xf32>
    %294 = arith.divf %292, %293 : vector<8x128xf32>
    %295 = math.tanh %289 : vector<8x128xf32>
    %296 = arith.select %5, %295, %294 : vector<8x128xi1>, vector<8x128xf32>
    %297 = vector.extract_strided_slice %296 {offsets = [0, 0], sizes = [8, 32], strides = [1, 1]} : vector<8x128xf32> to vector<8x32xf32>
    %298 = vector.extract_strided_slice %296 {offsets = [0, 32], sizes = [8, 32], strides = [1, 1]} : vector<8x128xf32> to vector<8x32xf32>
    %299 = vector.extract_strided_slice %296 {offsets = [0, 64], sizes = [8, 32], strides = [1, 1]} : vector<8x128xf32> to vector<8x32xf32>
    %300 = vector.extract_strided_slice %296 {offsets = [0, 96], sizes = [8, 32], strides = [1, 1]} : vector<8x128xf32> to vector<8x32xf32>
    %301 = arith.mulf %298, %281 : vector<8x32xf32>
    %302 = arith.mulf %297, %299 : vector<8x32xf32>
    %303 = arith.addf %301, %302 : vector<8x32xf32>
    %304 = math.tanh %303 : vector<8x32xf32>
    %305 = arith.mulf %300, %304 : vector<8x32xf32>
    %c4_i32_84 = arith.constant 4 : i32
    %c8_i32_85 = arith.constant 8 : i32
    %306 = arith.muli %c4_i32_84, %c8_i32_85 : i32
    %307 = tpu.assume_multiple %306, 8 : i32
    %308 = arith.index_cast %307 : i32 to index
    %c0_86 = arith.constant 0 : index
    %309 = vector.load %arg12[%308, %c0_86] : memref<64x128xf32, #tpu.memory_space<vmem>>, vector<8x128xf32>
    %cst_87 = arith.constant dense<0.000000e+00> : vector<8x128xf32>
    %310 = tpu.matmul %305, %215, %cst_87 {dimension_numbers = #tpu.dot_dimension_numbers<[1], [0], [0], [1], [0, 0, 1, 1], [], []>} : vector<8x32xf32>, vector<32x128xf32>, vector<8x128xf32> -> vector<8x128xf32>
    %311 = arith.addf %309, %310 : vector<8x128xf32>
    %312 = arith.negf %311 : vector<8x128xf32>
    %313 = math.exp %312 : vector<8x128xf32>
    %cst_88 = arith.constant 1.000000e+00 : f32
    %314 = vector.broadcast %cst_88 : f32 to vector<8x128xf32>
    %315 = arith.addf %314, %313 : vector<8x128xf32>
    %316 = arith.divf %314, %315 : vector<8x128xf32>
    %317 = math.tanh %311 : vector<8x128xf32>
    %318 = arith.select %5, %317, %316 : vector<8x128xi1>, vector<8x128xf32>
    %319 = vector.extract_strided_slice %318 {offsets = [0, 0], sizes = [8, 32], strides = [1, 1]} : vector<8x128xf32> to vector<8x32xf32>
    %320 = vector.extract_strided_slice %318 {offsets = [0, 32], sizes = [8, 32], strides = [1, 1]} : vector<8x128xf32> to vector<8x32xf32>
    %321 = vector.extract_strided_slice %318 {offsets = [0, 64], sizes = [8, 32], strides = [1, 1]} : vector<8x128xf32> to vector<8x32xf32>
    %322 = vector.extract_strided_slice %318 {offsets = [0, 96], sizes = [8, 32], strides = [1, 1]} : vector<8x128xf32> to vector<8x32xf32>
    %323 = arith.mulf %320, %303 : vector<8x32xf32>
    %324 = arith.mulf %319, %321 : vector<8x32xf32>
    %325 = arith.addf %323, %324 : vector<8x32xf32>
    %326 = math.tanh %325 : vector<8x32xf32>
    %327 = arith.mulf %322, %326 : vector<8x32xf32>
    %c5_i32_89 = arith.constant 5 : i32
    %c8_i32_90 = arith.constant 8 : i32
    %328 = arith.muli %c5_i32_89, %c8_i32_90 : i32
    %329 = tpu.assume_multiple %328, 8 : i32
    %330 = arith.index_cast %329 : i32 to index
    %c0_91 = arith.constant 0 : index
    %331 = vector.load %arg12[%330, %c0_91] : memref<64x128xf32, #tpu.memory_space<vmem>>, vector<8x128xf32>
    %cst_92 = arith.constant dense<0.000000e+00> : vector<8x128xf32>
    %332 = tpu.matmul %327, %215, %cst_92 {dimension_numbers = #tpu.dot_dimension_numbers<[1], [0], [0], [1], [0, 0, 1, 1], [], []>} : vector<8x32xf32>, vector<32x128xf32>, vector<8x128xf32> -> vector<8x128xf32>
    %333 = arith.addf %331, %332 : vector<8x128xf32>
    %334 = arith.negf %333 : vector<8x128xf32>
    %335 = math.exp %334 : vector<8x128xf32>
    %cst_93 = arith.constant 1.000000e+00 : f32
    %336 = vector.broadcast %cst_93 : f32 to vector<8x128xf32>
    %337 = arith.addf %336, %335 : vector<8x128xf32>
    %338 = arith.divf %336, %337 : vector<8x128xf32>
    %339 = math.tanh %333 : vector<8x128xf32>
    %340 = arith.select %5, %339, %338 : vector<8x128xi1>, vector<8x128xf32>
    %341 = vector.extract_strided_slice %340 {offsets = [0, 0], sizes = [8, 32], strides = [1, 1]} : vector<8x128xf32> to vector<8x32xf32>
    %342 = vector.extract_strided_slice %340 {offsets = [0, 32], sizes = [8, 32], strides = [1, 1]} : vector<8x128xf32> to vector<8x32xf32>
    %343 = vector.extract_strided_slice %340 {offsets = [0, 64], sizes = [8, 32], strides = [1, 1]} : vector<8x128xf32> to vector<8x32xf32>
    %344 = vector.extract_strided_slice %340 {offsets = [0, 96], sizes = [8, 32], strides = [1, 1]} : vector<8x128xf32> to vector<8x32xf32>
    %345 = arith.mulf %342, %325 : vector<8x32xf32>
    %346 = arith.mulf %341, %343 : vector<8x32xf32>
    %347 = arith.addf %345, %346 : vector<8x32xf32>
    %348 = math.tanh %347 : vector<8x32xf32>
    %349 = arith.mulf %344, %348 : vector<8x32xf32>
    %c6_i32_94 = arith.constant 6 : i32
    %c8_i32_95 = arith.constant 8 : i32
    %350 = arith.muli %c6_i32_94, %c8_i32_95 : i32
    %351 = tpu.assume_multiple %350, 8 : i32
    %352 = arith.index_cast %351 : i32 to index
    %c0_96 = arith.constant 0 : index
    %353 = vector.load %arg12[%352, %c0_96] : memref<64x128xf32, #tpu.memory_space<vmem>>, vector<8x128xf32>
    %cst_97 = arith.constant dense<0.000000e+00> : vector<8x128xf32>
    %354 = tpu.matmul %349, %215, %cst_97 {dimension_numbers = #tpu.dot_dimension_numbers<[1], [0], [0], [1], [0, 0, 1, 1], [], []>} : vector<8x32xf32>, vector<32x128xf32>, vector<8x128xf32> -> vector<8x128xf32>
    %355 = arith.addf %353, %354 : vector<8x128xf32>
    %356 = arith.negf %355 : vector<8x128xf32>
    %357 = math.exp %356 : vector<8x128xf32>
    %cst_98 = arith.constant 1.000000e+00 : f32
    %358 = vector.broadcast %cst_98 : f32 to vector<8x128xf32>
    %359 = arith.addf %358, %357 : vector<8x128xf32>
    %360 = arith.divf %358, %359 : vector<8x128xf32>
    %361 = math.tanh %355 : vector<8x128xf32>
    %362 = arith.select %5, %361, %360 : vector<8x128xi1>, vector<8x128xf32>
    %363 = vector.extract_strided_slice %362 {offsets = [0, 0], sizes = [8, 32], strides = [1, 1]} : vector<8x128xf32> to vector<8x32xf32>
    %364 = vector.extract_strided_slice %362 {offsets = [0, 32], sizes = [8, 32], strides = [1, 1]} : vector<8x128xf32> to vector<8x32xf32>
    %365 = vector.extract_strided_slice %362 {offsets = [0, 64], sizes = [8, 32], strides = [1, 1]} : vector<8x128xf32> to vector<8x32xf32>
    %366 = vector.extract_strided_slice %362 {offsets = [0, 96], sizes = [8, 32], strides = [1, 1]} : vector<8x128xf32> to vector<8x32xf32>
    %367 = arith.mulf %364, %347 : vector<8x32xf32>
    %368 = arith.mulf %363, %365 : vector<8x32xf32>
    %369 = arith.addf %367, %368 : vector<8x32xf32>
    %370 = math.tanh %369 : vector<8x32xf32>
    %371 = arith.mulf %366, %370 : vector<8x32xf32>
    %c7_i32_99 = arith.constant 7 : i32
    %c8_i32_100 = arith.constant 8 : i32
    %372 = arith.muli %c7_i32_99, %c8_i32_100 : i32
    %373 = tpu.assume_multiple %372, 8 : i32
    %374 = arith.index_cast %373 : i32 to index
    %c0_101 = arith.constant 0 : index
    %375 = vector.load %arg12[%374, %c0_101] : memref<64x128xf32, #tpu.memory_space<vmem>>, vector<8x128xf32>
    %cst_102 = arith.constant dense<0.000000e+00> : vector<8x128xf32>
    %376 = tpu.matmul %371, %215, %cst_102 {dimension_numbers = #tpu.dot_dimension_numbers<[1], [0], [0], [1], [0, 0, 1, 1], [], []>} : vector<8x32xf32>, vector<32x128xf32>, vector<8x128xf32> -> vector<8x128xf32>
    %377 = arith.addf %375, %376 : vector<8x128xf32>
    %378 = arith.negf %377 : vector<8x128xf32>
    %379 = math.exp %378 : vector<8x128xf32>
    %cst_103 = arith.constant 1.000000e+00 : f32
    %380 = vector.broadcast %cst_103 : f32 to vector<8x128xf32>
    %381 = arith.addf %380, %379 : vector<8x128xf32>
    %382 = arith.divf %380, %381 : vector<8x128xf32>
    %383 = math.tanh %377 : vector<8x128xf32>
    %384 = arith.select %5, %383, %382 : vector<8x128xi1>, vector<8x128xf32>
    %385 = vector.extract_strided_slice %384 {offsets = [0, 0], sizes = [8, 32], strides = [1, 1]} : vector<8x128xf32> to vector<8x32xf32>
    %386 = vector.extract_strided_slice %384 {offsets = [0, 32], sizes = [8, 32], strides = [1, 1]} : vector<8x128xf32> to vector<8x32xf32>
    %387 = vector.extract_strided_slice %384 {offsets = [0, 64], sizes = [8, 32], strides = [1, 1]} : vector<8x128xf32> to vector<8x32xf32>
    %388 = vector.extract_strided_slice %384 {offsets = [0, 96], sizes = [8, 32], strides = [1, 1]} : vector<8x128xf32> to vector<8x32xf32>
    %389 = arith.mulf %386, %369 : vector<8x32xf32>
    %390 = arith.mulf %385, %387 : vector<8x32xf32>
    %391 = arith.addf %389, %390 : vector<8x32xf32>
    %392 = math.tanh %391 : vector<8x32xf32>
    %393 = arith.mulf %388, %392 : vector<8x32xf32>
    %c8_i32_104 = arith.constant 8 : i32
    %c0_105 = arith.constant 0 : index
    %c0_106 = arith.constant 0 : index
    %394 = vector.load %arg7[%c0_105, %c0_106] : memref<32x32xf32, #tpu.memory_space<vmem>>, vector<32x32xf32>
    %cst_107 = arith.constant dense<0.000000e+00> : vector<8x32xf32>
    %395 = tpu.matmul %393, %394, %cst_107 {dimension_numbers = #tpu.dot_dimension_numbers<[1], [0], [0], [1], [0, 0, 1, 1], [], []>} : vector<8x32xf32>, vector<32x32xf32>, vector<8x32xf32> -> vector<8x32xf32>
    %c0_108 = arith.constant 0 : index
    %c0_109 = arith.constant 0 : index
    %396 = vector.load %arg8[%c0_108, %c0_109] : memref<1x32xf32, #tpu.memory_space<vmem>>, vector<1x32xf32>
    %397 = vector.broadcast %396 : vector<1x32xf32> to vector<8x32xf32>
    %398 = arith.addf %395, %397 : vector<8x32xf32>
    %cst_110 = arith.constant 0.000000e+00 : f32
    %399 = vector.broadcast %cst_110 : f32 to vector<8x32xf32>
    %400 = arith.maximumf %398, %399 : vector<8x32xf32>
    %c0_111 = arith.constant 0 : index
    %c0_112 = arith.constant 0 : index
    %401 = vector.load %arg9[%c0_111, %c0_112] : memref<32x1xf32, #tpu.memory_space<vmem>>, vector<32x1xf32>
    %cst_113 = arith.constant dense<0.000000e+00> : vector<8x1xf32>
    %402 = tpu.matmul %400, %401, %cst_113 {dimension_numbers = #tpu.dot_dimension_numbers<[1], [0], [0], [1], [0, 0, 1, 1], [], []>} : vector<8x32xf32>, vector<32x1xf32>, vector<8x1xf32> -> vector<8x1xf32>
    %c0_114 = arith.constant 0 : index
    %c0_115 = arith.constant 0 : index
    %403 = vector.load %arg10[%c0_114, %c0_115] : memref<1x1xf32, #tpu.memory_space<vmem>>, vector<1x1xf32>
    %404 = vector.broadcast %403 : vector<1x1xf32> to vector<8x1xf32>
    %405 = arith.addf %402, %404 : vector<8x1xf32>
    %c0_116 = arith.constant 0 : index
    %c0_117 = arith.constant 0 : index
    %406 = vector.load %arg11[%c0_116, %c0_117] : memref<8x1xf32, #tpu.memory_space<vmem>>, vector<8x1xf32>
    tpu.vector_store %arg11[%c0_116, %c0_117], %405 {strides = array<i32>} : memref<8x1xf32, #tpu.memory_space<vmem>>, vector<8x1xf32>,
    return
  }
}

</mosaic_0001>

<bundles_post_ra>
// kernel: tpu_custom_call.1
= control target key start
LH: loop header
LB: loop body
LE: loop exit
PB: predicated region body
PF: predicated region fallthrough
CT: control target
= control target key end

     0   :  { %s2032_s0 = inlined_call_operand.vmem [shape: f32[64,4], index: 0, kind: input, shape index: {}]   ;;  %s2033_s1 = inlined_call_operand.vmem [shape: f32[4,128], index: 1, kind: input, shape index: {}]   ;;  %s2034_s2 = inlined_call_operand.vmem [shape: f32[32,128], index: 2, kind: input, shape index: {}]   ;;  %s2035_s3 = inlined_call_operand.vmem [shape: f32[1,128], index: 3, kind: input, shape index: {}]   ;;  %s2036_s4 = inlined_call_operand.vmem [shape: f32[32,128], index: 4, kind: input, shape index: {}]   ;;  %s2037_s5 = inlined_call_operand.vmem [shape: f32[32,128], index: 5, kind: input, shape index: {}]   ;;  %s2038_s6 = inlined_call_operand.vmem [shape: f32[1,128], index: 6, kind: input, shape index: {}]   ;;  %s2039_s7 = inlined_call_operand.hbm [shape: f32[32,32], index: 7, kind: input, shape index: {}]   ;;  %s2040_s8 = inlined_call_operand.vmem [shape: f32[1,32], index: 8, kind: input, shape index: {}]   ;;  %s2041_s9 = inlined_call_operand.vmem [shape: f32[32,1], index: 9, kind: input, shape index: {}]   ;;  %s2042_s10 = inlined_call_operand.<no memory space> [shape: f32[1,1], index: 10, kind: input, shape index: {}]   ;;  %s2043_s11 = inlined_call_operand.vmem [shape: f32[8,1], index: 11, kind: output, shape index: {}]  }
   0x1   :  { %v16_v0 = vstv %s2042_s10 }
   0x2   :  { %17 = vst [vmem:[#allocation4] sm:$0x1] %v16_v0 }
   0x3   :  { %18 = vsyncpa [#allocation6], 0  ;;  %s37_s21 = sshll.u32 %s2039_s7, 4  ;;  %s1602_s22 = smov [#allocation5]   ;;  %s38_s21 = int_to_ptr.hbm [resolvable:$true] %s37_s21 }
   0x4   :  { %s39_s23 = sshll.u32 %s1602_s22, 4  ;;  %s1603_s24 = smov 128   ;;  %s40_s23 = int_to_ptr.vmem [resolvable:$true] %s39_s23 }
   0x5   :  { %s1604_s25 = smov 8  }
   0x6   :  { %45 = dma.hbm_to_vmem [thread:$0]  %s38_s21, 512, %s40_s23, [#allocation6], %s1603_s24, %s1603_s24, %s1604_s25  }
   0x7   :  { %1600 = dma.done.wait [#allocation6], 512  }
   0x8   :  { %1601 = vsyncadd [#allocation6], 4294966784  ;;  %vm99_vm0 = vcmask 1043456   ;;  %vm74_vm1 = vcmask 31744   ;;  %v1677_v1 = vld [vmem:[%s2034_s2 + $0x18] sm:$0xff]  ;;  %v1682_v2 = vld [vmem:[%s2034_s2 + $0x10] sm:$0xff]  ;;  %v56_v16 = vlaneseq }
   0x9   :  { %v69_v3 = vld [vmem:[%s2033_s1] sm:$0xf]  ;;  %173 = vmatpush.msra.mxu1 %v1677_v1  ;;  %v1694_v5 = vld [vmem:[%s2034_s2 + $0x8] sm:$0xff]  ;;  %241 = vmatpush.msra.mxu2 %v1677_v1  ;;  %v1605_v7 = vmov 0.0   ;;  %s1606_s17 = smov 64   ;;  %s1607_s18 = smov 32  }
   0xa   :  { %1388 = vmatpush.msk.msra.mxu0 %vm99_vm0, %v69_v3  ;;  %v61_v4 = vld [vmem:[%s2032_s0] sm:$0xff]  ;;  %517 = vmatpush.msra.mxu3 %v1677_v1  ;;  %v57_v18 = vand.u32 127, %v56_v16  ;;  %v62_v39 = vld [vmem:[%s2032_s0 + $0x8] sm:$0xff]  ;;  %vm157_vm9 = vcmask 261120   ;;  %v64_v3 = vld [vmem:[%s2032_s0 + $0x18] sm:$0xff] }
   0xb   :  { %1389 = vmatmul.msk.f32.vlgmr.msra.gmra.mxu0 %vm74_vm1, %v61_v4  ;;  %174 = vmatpush.msra.mxu1 %v1682_v2  ;;  %v1703_v6 = vld [vmem:[%s2034_s2] sm:$0xff] }
   0xc   :  { %310 = vmatpush.msrb.mxu0 %v1677_v1  ;;  %242 = vmatpush.msra.mxu2 %v1682_v2  ;;  %v1733_v8 = vld [vmem:[%s2035_s3] ss:$0 sm:$0xff]  ;;  %vm58_vm2 = vcmp.ge.s32.totalorder %v57_v18, 64  ;;  %vm59_vm3 = vcmp.lt.s32.totalorder %v57_v18, 96  ;;  %v1316_v24 = vld [vmem:[#allocation5] sm:$0xff] }
   0xd   :  { %175 = vmatpush.msra.mxu1 %v1694_v5  ;;  %518 = vmatpush.msra.mxu3 %v1682_v2  ;;  %vm1736_vm5 = vmand %vm58_vm2, %vm59_vm3  ;;  %v65_v4 = vld [vmem:[%s2032_s0 + $0x20] sm:$0xff] }
   0xe   :  { %311 = vmatpush.msrb.mxu0 %v1682_v2  ;;  %243 = vmatpush.msra.mxu2 %v1694_v5 }
   0xf   :  { %176 = vmatpush.msra.mxu1 %v1703_v6  ;;  %519 = vmatpush.msra.mxu3 %v1694_v5 }
  0x10   :  { %312 = vmatpush.msrb.mxu0 %v1694_v5  ;;  %177 = vmatmul.f32.vlgmr.msra.gmra.mxu1 %v1605_v7 }
  0x11   :  { %244 = vmatpush.msra.mxu2 %v1703_v6  ;;  %379 = vmatpush.msrb.mxu1 %v1677_v1 }
  0x12   :  { %313 = vmatpush.msrb.mxu0 %v1703_v6  ;;  %520 = vmatpush.msra.mxu3 %v1703_v6 }
  0x13   :  { %448 = vmatpush.msrb.mxu2 %v1677_v1  ;;  %380 = vmatpush.msrb.mxu1 %v1682_v2 }
  0x14   :  { %1390 = vmatmul.msk.f32.gmra.mxu0 %vm74_vm1, %v62_v39 }
  0x15   :  { %449 = vmatpush.msrb.mxu2 %v1682_v2  ;;  %381 = vmatpush.msrb.mxu1 %v1694_v5 }
  0x17   :  { %450 = vmatpush.msrb.mxu2 %v1694_v5  ;;  %382 = vmatpush.msrb.mxu1 %v1703_v6 }
  0x19   :  { %451 = vmatpush.msrb.mxu2 %v1703_v6  ;;  %586 = vmatpush.msra.mxu1 %v1677_v1 }
  0x1b   :  { %587 = vmatpush.msra.mxu1 %v1682_v2 }
  0x1d   :  { %588 = vmatpush.msra.mxu1 %v1694_v5 }
  0x1f   :  { %589 = vmatpush.msra.mxu1 %v1703_v6 }
  0x88   :  { %v120_v9 = vpop.f32.mrf.mxu0 }
  0x89   :  { %v121_v10 = vadd.f32 %v1733_v8, %v120_v9 }
  0x8d   :  { %v178_v11 = vpop.f32.mrf.mxu1 }
  0x8e   :  { %v181_v12 = vadd.f32 %v178_v11, %v121_v10  ;;  %v67_v10 = vld [vmem:[%s2032_s0 + $0x30] sm:$0xff]  ;;  %v68_v11 = vld [vmem:[%s2032_s0 + $0x38] sm:$0xff] }
  0x90   :  { %v1397_v13 = vmul.f32 -1.442695, %v181_v12 }
  0x91   :  { %v123_v41 = vpop.f32.mrf.mxu0 }
  0x92   :  { %1447 = vpow2.f32 %v1397_v13  ;;  %v124_v42 = vadd.f32 %v1733_v8, %v123_v41 }
  0x98   :  { %v1448_v14 = vpop.eup %1447 }
  0x99   :  { %v185_v15 = vadd.f32 1.0, %v1448_v14 }
  0x9b   :  { %1449 = vrcp.f32 %v185_v15  ;;  %v197_v21 = vand.u32 2147483648, %v185_v15  ;;  %v195_v23 = vand.u32 2147483647, %v185_v15  ;;  %vm191_vm6 = vweird.f32 %v185_v15 }
  0x9c   :  { %1451 = vtanh.f32 %v181_v12 }
  0x9d   :  { %v198_v26 = vor.u32 1.1754944e-38, %v197_v21  ;;  %vm196_vm8 = vcmp.eq.f32.partialorder %v195_v23, 8.507059e+37 }
  0xa1   :  { %v1450_v17 = vpop.eup %1449 }
  0xa2   :  { %v187_v19 = vmul.f32 %v1450_v17, %v185_v15  ;;  %vm192_vm4 = vweird.f32 %v1450_v17  ;;  %v1452_v28 = vpop.eup %1451 }
  0xa3   :  { %vm193_vm7 = vmor %vm191_vm6, %vm192_vm4 }
  0xa4   :  { %v188_v20 = vsub.f32 1.0, %v187_v19 }
  0xa6   :  { %v189_v22 = vmul.f32 %v1450_v17, %v188_v20 }
  0xa8   :  { %v190_v25 = vadd.f32 %v1450_v17, %v189_v22 }
  0xaa   :  { %v194_v27 = vsel %vm193_vm7, %v1450_v17, %v190_v25 }
  0xab   :  { %v199_v29 = vsel %vm196_vm8, %v198_v26, %v194_v27 }
  0xac   :  { %v202_v30 = vsel %vm1736_vm5, %v1452_v28, %v199_v29 }
  0xad   :  { %205 = vrot.lane.b32.xlu0 %v202_v30, %s1606_s17  ;;  %v203_v33 = vmul.f32 0.0, %v202_v30 }
 0x11f   :  { %v206_v31 = vpop.permute.xlu0 %205 }
 0x120   :  { %v208_v32 = vmul.f32 %v206_v31, %v202_v30 }
 0x122   :  { %210 = vrot.lane.b32.xlu0 %v208_v32, %s1607_s18 }
 0x194   :  { %v211_v34 = vpop.permute.xlu0 %210 }
 0x195   :  { %v213_v35 = vadd.f32 %v211_v34, %v203_v33 }
 0x197   :  { %1453 = vtanh.f32 %v213_v35 }
 0x19d   :  { %v1454_v36 = vpop.eup %1453 }
 0x19e   :  { %216 = vrot.lane.b32.xlu1 %v1454_v36, %s1606_s17 }
 0x210   :  { %v217_v37 = vpop.permute.xlu1 %216 }
 0x211   :  { %v219_v38 = vmul.f32 %v217_v37, %v202_v30 }
 0x213   :  { %221 = vrot.lane.b32.xlu1 %v219_v38, %s1607_s18 }
 0x285   :  { %v222_v40 = vpop.permute.xlu1 %221 }
 0x286   :  { %224 = vst.msk [vmem:[#allocation3] sm:$0xff] %vm157_vm9, %v222_v40  ;;  %1398 = vmatmul.msk.f32.vlgmr.msra.gmra.mxu2 %vm157_vm9, %v222_v40 }
 0x287   :  { %655 = vmatpush.msra.mxu2 %v1677_v1 }
 0x289   :  { %656 = vmatpush.msra.mxu2 %v1682_v2  ;;  %v63_v2 = vld [vmem:[%s2032_s0 + $0x10] sm:$0xff] }
 0x28a   :  { %1391 = vmatmul.msk.f32.gmra.mxu0 %vm74_vm1, %v63_v2 }
 0x28b   :  { %657 = vmatpush.msra.mxu2 %v1694_v5  ;;  %v66_v5 = vld [vmem:[%s2032_s0 + $0x28] sm:$0xff] }
 0x28d   :  { %658 = vmatpush.msra.mxu2 %v1703_v6 }
 0x292   :  { %1392 = vmatmul.msk.f32.gmra.mxu0 %vm74_vm1, %v64_v3 }
 0x29a   :  { %1393 = vmatmul.msk.f32.gmra.mxu0 %vm74_vm1, %v65_v4 }
 0x2a2   :  { %1394 = vmatmul.msk.f32.gmra.mxu0 %vm74_vm1, %v66_v5 }
 0x2aa   :  { %1395 = vmatmul.msk.f32.gmra.mxu0 %vm74_vm1, %v67_v10 }
 0x2b2   :  { %1396 = vmatmul.msk.f32.gmra.mxu0 %vm74_vm1, %v68_v11 }
 0x307   :  { %v126_v13 = vpop.f32.mrf.mxu0 }
 0x308   :  { %v127_v19 = vadd.f32 %v1733_v8, %v126_v13 }
 0x309   :  { %v246_v43 = vpop.f32.mrf.mxu2 }
 0x30a   :  { %v249_v44 = vadd.f32 %v246_v43, %v124_v42 }
 0x30c   :  { %v1399_v45 = vmul.f32 -1.442695, %v249_v44 }
 0x30e   :  { %1455 = vpow2.f32 %v1399_v45 }
 0x30f   :  { %v129_v14 = vpop.f32.mrf.mxu0 }
 0x314   :  { %v1456_v46 = vpop.eup %1455 }
 0x315   :  { %v253_v47 = vadd.f32 1.0, %v1456_v46 }
 0x317   :  { %1457 = vrcp.f32 %v253_v47  ;;  %v265_v51 = vand.u32 2147483648, %v253_v47  ;;  %v263_v53 = vand.u32 2147483647, %v253_v47  ;;  %vm259_vm11 = vweird.f32 %v253_v47  ;;  %v1789_v15 = vpop.f32.mrf.mxu0 }
 0x318   :  { %1459 = vtanh.f32 %v249_v44 }
 0x319   :  { %v266_v55 = vor.u32 1.1754944e-38, %v265_v51  ;;  %vm264_vm13 = vcmp.eq.f32.partialorder %v263_v53, 8.507059e+37 }
 0x31d   :  { %v1458_v48 = vpop.eup %1457 }
 0x31e   :  { %v255_v49 = vmul.f32 %v1458_v48, %v253_v47  ;;  %vm260_vm10 = vweird.f32 %v1458_v48  ;;  %v1460_v57 = vpop.eup %1459  ;;  %v130_v47 = vadd.f32 %v1733_v8, %v129_v14 }
 0x31f   :  { %vm261_vm12 = vmor %vm259_vm11, %vm260_vm10  ;;  %v1791_v16 = vpop.f32.mrf.mxu0 }
 0x320   :  { %v256_v50 = vsub.f32 1.0, %v255_v49 }
 0x322   :  { %v257_v52 = vmul.f32 %v1458_v48, %v256_v50 }
 0x324   :  { %v258_v54 = vadd.f32 %v1458_v48, %v257_v52 }
 0x326   :  { %v262_v56 = vsel %vm261_vm12, %v1458_v48, %v258_v54 }
 0x327   :  { %v267_v58 = vsel %vm264_vm13, %v266_v55, %v262_v56  ;;  %v1793_v17 = vpop.f32.mrf.mxu0 }
 0x328   :  { %v270_v59 = vsel %vm1736_vm5, %v1460_v57, %v267_v58 }
 0x329   :  { %273 = vrot.lane.b32.xlu2 %v270_v59, %s1606_s17  ;;  %v271_v62 = vmul.f32 %v270_v59, %v213_v35 }
 0x32f   :  { %v1795_v18 = vpop.f32.mrf.mxu0 }
 0x383   :  { %v274_v60 = vpop.permute.xlu2 %273 }
 0x384   :  { %v276_v61 = vmul.f32 %v274_v60, %v270_v59 }
 0x386   :  { %278 = vrot.lane.b32.xlu2 %v276_v61, %s1607_s18 }
 0x3e0   :  { %v279_v63 = vpop.permute.xlu2 %278 }
 0x3e1   :  { %v281_v0 = vadd.f32 %v279_v63, %v271_v62 }
 0x3e3   :  { %1461 = vtanh.f32 %v281_v0 }
 0x3e9   :  { %v1462_v1 = vpop.eup %1461 }
 0x3ea   :  { %284 = vrot.lane.b32.xlu0 %v1462_v1, %s1606_s17 }
 0x45c   :  { %v285_v6 = vpop.permute.xlu0 %284 }
 0x45d   :  { %v287_v9 = vmul.f32 %v285_v6, %v270_v59 }
 0x45f   :  { %289 = vrot.lane.b32.xlu1 %v287_v9, %s1607_s18 }
 0x4d1   :  { %v290_v12 = vpop.permute.xlu1 %289 }
 0x4d2   :  { %293 = vst.msk [vmem:[#allocation3 + $0x8] sm:$0xff] %vm157_vm9, %v290_v12  ;;  %1400 = vmatmul.msk.f32.vlgmr.msrb.gmra.mxu0 %vm157_vm9, %v290_v12  ;;  %v133_v12 = vadd.f32 %v1733_v8, %v1789_v15 }
 0x54f   :  { %v315_v20 = vpop.f32.mrf.mxu0 }
 0x550   :  { %v318_v21 = vadd.f32 %v315_v20, %v127_v19 }
 0x552   :  { %v1401_v22 = vmul.f32 -1.442695, %v318_v21 }
 0x554   :  { %1463 = vpow2.f32 %v1401_v22 }
 0x55a   :  { %v1464_v23 = vpop.eup %1463 }
 0x55b   :  { %v322_v25 = vadd.f32 1.0, %v1464_v23 }
 0x55d   :  { %1465 = vrcp.f32 %v322_v25  ;;  %v334_v29 = vand.u32 2147483648, %v322_v25  ;;  %v332_v31 = vand.u32 2147483647, %v322_v25  ;;  %vm328_vm15 = vweird.f32 %v322_v25 }
 0x55e   :  { %1467 = vtanh.f32 %v318_v21 }
 0x55f   :  { %v335_v33 = vor.u32 1.1754944e-38, %v334_v29  ;;  %vm333_vm1 = vcmp.eq.f32.partialorder %v332_v31, 8.507059e+37 }
 0x563   :  { %v1466_v26 = vpop.eup %1465 }
 0x564   :  { %v324_v27 = vmul.f32 %v1466_v26, %v322_v25  ;;  %vm329_vm14 = vweird.f32 %v1466_v26  ;;  %v1468_v35 = vpop.eup %1467 }
 0x565   :  { %vm330_vm0 = vmor %vm328_vm15, %vm329_vm14 }
 0x566   :  { %v325_v28 = vsub.f32 1.0, %v324_v27 }
 0x568   :  { %v326_v30 = vmul.f32 %v1466_v26, %v325_v28 }
 0x56a   :  { %v327_v32 = vadd.f32 %v1466_v26, %v326_v30 }
 0x56c   :  { %v331_v34 = vsel %vm330_vm0, %v1466_v26, %v327_v32 }
 0x56d   :  { %v336_v36 = vsel %vm333_vm1, %v335_v33, %v331_v34 }
 0x56e   :  { %v339_v37 = vsel %vm1736_vm5, %v1468_v35, %v336_v36 }
 0x56f   :  { %342 = vrot.lane.b32.xlu2 %v339_v37, %s1606_s17  ;;  %v340_v40 = vmul.f32 %v339_v37, %v281_v0 }
 0x5c9   :  { %v343_v38 = vpop.permute.xlu2 %342 }
 0x5ca   :  { %v345_v39 = vmul.f32 %v343_v38, %v339_v37 }
 0x5cc   :  { %347 = vrot.lane.b32.xlu0 %v345_v39, %s1607_s18 }
 0x63e   :  { %v348_v41 = vpop.permute.xlu0 %347 }
 0x63f   :  { %v350_v42 = vadd.f32 %v348_v41, %v340_v40 }
 0x641   :  { %1469 = vtanh.f32 %v350_v42 }
 0x647   :  { %v1470_v43 = vpop.eup %1469 }
 0x648   :  { %353 = vrot.lane.b32.xlu1 %v1470_v43, %s1606_s17  ;;  %v718_v43 = vld [vmem:[%s2036_s4 + $0x10] sm:$0xff] }
 0x6ba   :  { %v354_v44 = vpop.permute.xlu1 %353 }
 0x6bb   :  { %v356_v45 = vmul.f32 %v354_v44, %v339_v37  ;;  %v717_v44 = vld [vmem:[%s2036_s4 + $0x8] sm:$0xff] }
 0x6bd   :  { %358 = vrot.lane.b32.xlu2 %v356_v45, %s1607_s18  ;;  %v716_v45 = vld [vmem:[%s2036_s4] sm:$0xff] }
 0x717   :  { %v359_v46 = vpop.permute.xlu2 %358 }
 0x718   :  { %362 = vst.msk [vmem:[#allocation3 + $0x10] sm:$0xff] %vm157_vm9, %v359_v46  ;;  %1402 = vmatmul.msk.f32.vlgmr.msrb.gmra.mxu1 %vm157_vm9, %v359_v46 }
 0x795   :  { %v384_v48 = vpop.f32.mrf.mxu1 }
 0x796   :  { %v387_v49 = vadd.f32 %v384_v48, %v130_v47  ;;  %v708_v47 = vld [vmem:[#allocation3] sm:$0xff]  ;;  %v709_v48 = vld [vmem:[#allocation3 + $0x8] sm:$0xff] }
 0x798   :  { %v1403_v50 = vmul.f32 -1.442695, %v387_v49 }
 0x79a   :  { %1471 = vpow2.f32 %v1403_v50 }
 0x7a0   :  { %v1472_v51 = vpop.eup %1471 }
 0x7a1   :  { %v391_v52 = vadd.f32 1.0, %v1472_v51 }
 0x7a3   :  { %1473 = vrcp.f32 %v391_v52  ;;  %v403_v56 = vand.u32 2147483648, %v391_v52  ;;  %v401_v58 = vand.u32 2147483647, %v391_v52  ;;  %vm397_vm3 = vweird.f32 %v391_v52 }
 0x7a4   :  { %1475 = vtanh.f32 %v387_v49  ;;  %v710_v49 = vld [vmem:[#allocation3 + $0x10] sm:$0xff] }
 0x7a5   :  { %v404_v60 = vor.u32 1.1754944e-38, %v403_v56  ;;  %vm402_vm6 = vcmp.eq.f32.partialorder %v401_v58, 8.507059e+37 }
 0x7a9   :  { %v1474_v53 = vpop.eup %1473 }
 0x7aa   :  { %v393_v54 = vmul.f32 %v1474_v53, %v391_v52  ;;  %vm398_vm2 = vweird.f32 %v1474_v53  ;;  %v1476_v62 = vpop.eup %1475  ;;  %v136_v52 = vadd.f32 %v1733_v8, %v1791_v16 }
 0x7ab   :  { %vm399_vm4 = vmor %vm397_vm3, %vm398_vm2 }
 0x7ac   :  { %v394_v55 = vsub.f32 1.0, %v393_v54 }
 0x7ae   :  { %v395_v57 = vmul.f32 %v1474_v53, %v394_v55 }
 0x7b0   :  { %v396_v59 = vadd.f32 %v1474_v53, %v395_v57 }
 0x7b2   :  { %v400_v61 = vsel %vm399_vm4, %v1474_v53, %v396_v59 }
 0x7b3   :  { %v405_v63 = vsel %vm402_vm6, %v404_v60, %v400_v61 }
 0x7b4   :  { %v408_v0 = vsel %vm1736_vm5, %v1476_v62, %v405_v63 }
 0x7b5   :  { %411 = vrot.lane.b32.xlu0 %v408_v0, %s1606_s17  ;;  %v409_v3 = vmul.f32 %v408_v0, %v350_v42  ;;  %v719_v42 = vld [vmem:[%s2036_s4 + $0x18] sm:$0xff] }
 0x7b6   :  { %760 = vmatpush.msrb.mxu3 %v719_v42 }
 0x7b8   :  { %761 = vmatpush.msrb.mxu3 %v718_v43 }
 0x7ba   :  { %762 = vmatpush.msrb.mxu3 %v717_v44 }
 0x7bc   :  { %763 = vmatpush.msrb.mxu3 %v716_v45 }
 0x827   :  { %v412_v1 = vpop.permute.xlu0 %411 }
 0x828   :  { %v414_v2 = vmul.f32 %v412_v1, %v408_v0 }
 0x82a   :  { %416 = vrot.lane.b32.xlu1 %v414_v2, %s1607_s18 }
 0x89c   :  { %v417_v4 = vpop.permute.xlu1 %416 }
 0x89d   :  { %v419_v5 = vadd.f32 %v417_v4, %v409_v3 }
 0x89f   :  { %1477 = vtanh.f32 %v419_v5 }
 0x8a5   :  { %v1478_v6 = vpop.eup %1477 }
 0x8a6   :  { %422 = vrot.lane.b32.xlu2 %v1478_v6, %s1606_s17 }
 0x900   :  { %v423_v9 = vpop.permute.xlu2 %422 }
 0x901   :  { %v425_v10 = vmul.f32 %v423_v9, %v408_v0 }
 0x903   :  { %427 = vrot.lane.b32.xlu0 %v425_v10, %s1607_s18 }
 0x975   :  { %v428_v11 = vpop.permute.xlu0 %427 }
 0x976   :  { %431 = vst.msk [vmem:[#allocation3 + $0x18] sm:$0xff] %vm157_vm9, %v428_v11  ;;  %1404 = vmatmul.msk.f32.vlgmr.msrb.gmra.mxu2 %vm157_vm9, %v428_v11 }
 0x97d   :  { %v711_v50 = vld [vmem:[#allocation3 + $0x18] sm:$0xff] }
 0x9f9   :  { %v453_v13 = vpop.f32.mrf.mxu2 }
 0x9fa   :  { %v456_v14 = vadd.f32 %v453_v13, %v133_v12 }
 0x9fc   :  { %v1405_v19 = vmul.f32 -1.442695, %v456_v14 }
 0x9fe   :  { %1479 = vpow2.f32 %v1405_v19  ;;  %v1856_v19 = vld [vmem:[%s2037_s5 + $0x18] sm:$0xff] }
 0x9ff   :  { %814 = vmatpush.msrb.mxu1 %v1856_v19  ;;  %879 = vmatpush.msrb.mxu2 %v1856_v19 }
 0xa04   :  { %v1480_v20 = vpop.eup %1479 }
 0xa05   :  { %v460_v21 = vadd.f32 1.0, %v1480_v20  ;;  %v1861_v20 = vld [vmem:[%s2037_s5 + $0x10] sm:$0xff] }
 0xa06   :  { %815 = vmatpush.msrb.mxu1 %v1861_v20  ;;  %880 = vmatpush.msrb.mxu2 %v1861_v20 }
 0xa07   :  { %1481 = vrcp.f32 %v460_v21  ;;  %v472_v26 = vand.u32 2147483648, %v460_v21  ;;  %v470_v28 = vand.u32 2147483647, %v460_v21  ;;  %vm466_vm8 = vweird.f32 %v460_v21 }
 0xa08   :  { %1483 = vtanh.f32 %v456_v14 }
 0xa09   :  { %v473_v30 = vor.u32 1.1754944e-38, %v472_v26  ;;  %vm471_vm11 = vcmp.eq.f32.partialorder %v470_v28, 8.507059e+37  ;;  %v139_v26 = vadd.f32 %v1733_v8, %v1793_v17 }
 0xa0d   :  { %v1482_v22 = vpop.eup %1481 }
 0xa0e   :  { %v462_v23 = vmul.f32 %v1482_v22, %v460_v21  ;;  %vm467_vm7 = vweird.f32 %v1482_v22  ;;  %v1484_v31 = vpop.eup %1483  ;;  %v1868_v21 = vld [vmem:[%s2037_s5 + $0x8] sm:$0xff] }
 0xa0f   :  { %vm468_vm10 = vmor %vm466_vm8, %vm467_vm7  ;;  %816 = vmatpush.msrb.mxu1 %v1868_v21  ;;  %881 = vmatpush.msrb.mxu2 %v1868_v21 }
 0xa10   :  { %v463_v25 = vsub.f32 1.0, %v462_v23 }
 0xa12   :  { %v464_v27 = vmul.f32 %v1482_v22, %v463_v25 }
 0xa14   :  { %v465_v29 = vadd.f32 %v1482_v22, %v464_v27 }
 0xa16   :  { %v469_v15 = vsel %vm468_vm10, %v1482_v22, %v465_v29  ;;  %v1875_v22 = vld [vmem:[%s2037_s5] sm:$0xff] }
 0xa17   :  { %v474_v32 = vsel %vm471_vm11, %v473_v30, %v469_v15  ;;  %817 = vmatpush.msrb.mxu1 %v1875_v22  ;;  %882 = vmatpush.msrb.mxu2 %v1875_v22  ;;  %v1898_v29 = vld [vmem:[%s2038_s6] ss:$0 sm:$0xff] }
 0xa18   :  { %v477_v33 = vsel %vm1736_vm5, %v1484_v31, %v474_v32 }
 0xa19   :  { %480 = vrot.lane.b32.xlu1 %v477_v33, %s1606_s17  ;;  %v478_v36 = vmul.f32 %v477_v33, %v419_v5 }
 0xa8b   :  { %v481_v34 = vpop.permute.xlu1 %480 }
 0xa8c   :  { %v483_v35 = vmul.f32 %v481_v34, %v477_v33 }
 0xa8e   :  { %485 = vrot.lane.b32.xlu2 %v483_v35, %s1607_s18 }
 0xae8   :  { %v486_v37 = vpop.permute.xlu2 %485 }
 0xae9   :  { %v488_v38 = vadd.f32 %v486_v37, %v478_v36 }
 0xaeb   :  { %1485 = vtanh.f32 %v488_v38 }
 0xaf1   :  { %v1486_v39 = vpop.eup %1485 }
 0xaf2   :  { %491 = vrot.lane.b32.xlu0 %v1486_v39, %s1606_s17 }
 0xb64   :  { %v492_v40 = vpop.permute.xlu0 %491 }
 0xb65   :  { %v494_v41 = vmul.f32 %v492_v40, %v477_v33 }
 0xb67   :  { %496 = vrot.lane.b32.xlu1 %v494_v41, %s1607_s18 }
 0xbd9   :  { %v497_v46 = vpop.permute.xlu1 %496 }
 0xbda   :  { %500 = vst.msk [vmem:[#allocation3 + $0x20] sm:$0xff] %vm157_vm9, %v497_v46  ;;  %1406 = vmatmul.msk.f32.vlgmr.msra.gmra.mxu3 %vm157_vm9, %v497_v46 }
 0xbe1   :  { %v712_v51 = vld [vmem:[#allocation3 + $0x20] sm:$0xff] }
 0xbe2   :  { %1412 = vmatmul.msk.f32.vlgmr.msrb.gmra.mxu3 %vm157_vm9, %v708_v47 }
 0xbea   :  { %1413 = vmatmul.msk.f32.gmra.mxu3 %vm157_vm9, %v709_v48 }
 0xbf2   :  { %1414 = vmatmul.msk.f32.gmra.mxu3 %vm157_vm9, %v710_v49 }
 0xbfa   :  { %1415 = vmatmul.msk.f32.gmra.mxu3 %vm157_vm9, %v711_v50 }
 0xc02   :  { %1416 = vmatmul.msk.f32.gmra.mxu3 %vm157_vm9, %v712_v51 }
 0xc5d   :  { %v522_v53 = vpop.f32.mrf.mxu3 }
 0xc5e   :  { %v525_v54 = vadd.f32 %v522_v53, %v136_v52 }
 0xc60   :  { %v1407_v55 = vmul.f32 -1.442695, %v525_v54 }
 0xc62   :  { %1487 = vpow2.f32 %v1407_v55 }
 0xc68   :  { %v1488_v56 = vpop.eup %1487 }
 0xc69   :  { %v529_v57 = vadd.f32 1.0, %v1488_v56 }
 0xc6b   :  { %1489 = vrcp.f32 %v529_v57  ;;  %v541_v61 = vand.u32 2147483648, %v529_v57  ;;  %v539_v63 = vand.u32 2147483647, %v529_v57  ;;  %vm535_vm13 = vweird.f32 %v529_v57 }
 0xc6c   :  { %1491 = vtanh.f32 %v525_v54 }
 0xc6d   :  { %v542_v1 = vor.u32 1.1754944e-38, %v541_v61  ;;  %vm540_vm15 = vcmp.eq.f32.partialorder %v539_v63, 8.507059e+37 }
 0xc71   :  { %v1490_v58 = vpop.eup %1489 }
 0xc72   :  { %v531_v59 = vmul.f32 %v1490_v58, %v529_v57  ;;  %vm536_vm12 = vweird.f32 %v1490_v58  ;;  %v1492_v2 = vpop.eup %1491 }
 0xc73   :  { %vm537_vm14 = vmor %vm535_vm13, %vm536_vm12 }
 0xc74   :  { %v532_v60 = vsub.f32 1.0, %v531_v59 }
 0xc76   :  { %v533_v62 = vmul.f32 %v1490_v58, %v532_v60 }
 0xc78   :  { %v534_v0 = vadd.f32 %v1490_v58, %v533_v62 }
 0xc7a   :  { %v538_v16 = vsel %vm537_vm14, %v1490_v58, %v534_v0 }
 0xc7b   :  { %v543_v3 = vsel %vm540_vm15, %v542_v1, %v538_v16 }
 0xc7c   :  { %v546_v4 = vsel %vm1736_vm5, %v1492_v2, %v543_v3 }
 0xc7d   :  { %549 = vrot.lane.b32.xlu2 %v546_v4, %s1606_s17  ;;  %v547_v9 = vmul.f32 %v546_v4, %v488_v38 }
 0xcd7   :  { %v550_v5 = vpop.permute.xlu2 %549 }
 0xcd8   :  { %v552_v6 = vmul.f32 %v550_v5, %v546_v4 }
 0xcda   :  { %554 = vrot.lane.b32.xlu0 %v552_v6, %s1607_s18 }
 0xd4c   :  { %v555_v10 = vpop.permute.xlu0 %554 }
 0xd4d   :  { %v1848_v11 = vadd.f32 %v555_v10, %v547_v9 }
 0xd4f   :  { %1493 = vtanh.f32 %v1848_v11 }
 0xd55   :  { %v1494_v12 = vpop.eup %1493 }
 0xd56   :  { %560 = vrot.lane.b32.xlu1 %v1494_v12, %s1606_s17 }
 0xdc8   :  { %v561_v13 = vpop.permute.xlu1 %560 }
 0xdc9   :  { %v563_v14 = vmul.f32 %v561_v13, %v546_v4 }
 0xdcb   :  { %565 = vrot.lane.b32.xlu2 %v563_v14, %s1607_s18 }
 0xe25   :  { %v566_v23 = vpop.permute.xlu2 %565 }
 0xe26   :  { %569 = vst.msk [vmem:[#allocation3 + $0x28] sm:$0xff] %vm157_vm9, %v566_v23  ;;  %1408 = vmatmul.msk.f32.vlgmr.msra.gmra.mxu1 %vm157_vm9, %v566_v23 }
 0xe27   :  { %944 = vmatpush.msra.mxu1 %v1856_v19 }
 0xe29   :  { %945 = vmatpush.msra.mxu1 %v1861_v20 }
 0xe2b   :  { %946 = vmatpush.msra.mxu1 %v1868_v21 }
 0xe2d   :  { %v713_v25 = vld [vmem:[#allocation3 + $0x28] sm:$0xff]  ;;  %947 = vmatpush.msra.mxu1 %v1875_v22 }
 0xe2e   :  { %1417 = vmatmul.msk.f32.gmra.mxu3 %vm157_vm9, %v713_v25  ;;  %818 = vmatmul.f32.vlgmr.msrb.gmra.mxu1 %v1605_v7  ;;  %v765_v7 = vpop.f32.mrf.mxu3 }
 0xe2f   :  { %1074 = vmatpush.msrb.mxu1 %v1856_v19  ;;  %v766_v15 = vadd.f32 %v1898_v29, %v765_v7 }
 0xe31   :  { %1075 = vmatpush.msrb.mxu1 %v1861_v20 }
 0xe33   :  { %1076 = vmatpush.msrb.mxu1 %v1868_v21 }
 0xe35   :  { %1077 = vmatpush.msrb.mxu1 %v1875_v22 }
 0xea3   :  { %v591_v27 = vpop.f32.mrf.mxu1 }
 0xea4   :  { %v594_v28 = vadd.f32 %v591_v27, %v139_v26  ;;  %v768_v26 = vpop.f32.mrf.mxu3 }
 0xea5   :  { %v769_v27 = vadd.f32 %v1898_v29, %v768_v26 }
 0xea6   :  { %v1409_v30 = vmul.f32 -1.442695, %v594_v28 }
 0xea8   :  { %1495 = vpow2.f32 %v1409_v30 }
 0xeab   :  { %v819_v31 = vpop.f32.mrf.mxu1 }
 0xeac   :  { %v822_v32 = vadd.f32 %v819_v31, %v766_v15 }
 0xeae   :  { %v1496_v33 = vpop.eup %1495  ;;  %v1420_v34 = vmul.f32 -1.442695, %v822_v32 }
 0xeaf   :  { %v598_v35 = vadd.f32 1.0, %v1496_v33 }
 0xeb0   :  { %1497 = vpow2.f32 %v1420_v34 }
 0xeb1   :  { %1499 = vrcp.f32 %v598_v35  ;;  %v610_v39 = vand.u32 2147483648, %v598_v35  ;;  %v608_v41 = vand.u32 2147483647, %v598_v35  ;;  %vm604_vm1 = vweird.f32 %v598_v35 }
 0xeb3   :  { %v611_v44 = vor.u32 1.1754944e-38, %v610_v39  ;;  %vm609_vm3 = vcmp.eq.f32.partialorder %v608_v41, 8.507059e+37 }
 0xeb6   :  { %v1498_v8 = vpop.eup %1497 }
 0xeb7   :  { %v1500_v17 = vpop.eup %1499  ;;  %v826_v36 = vadd.f32 1.0, %v1498_v8 }
 0xeb8   :  { %v600_v37 = vmul.f32 %v1500_v17, %v598_v35  ;;  %vm605_vm0 = vweird.f32 %v1500_v17 }
 0xeb9   :  { %1501 = vrcp.f32 %v826_v36  ;;  %vm606_vm2 = vmor %vm604_vm1, %vm605_vm0  ;;  %v838_v51 = vand.u32 2147483648, %v826_v36  ;;  %v836_v53 = vand.u32 2147483647, %v826_v36  ;;  %vm832_vm6 = vweird.f32 %v826_v36 }
 0xeba   :  { %v601_v38 = vsub.f32 1.0, %v600_v37  ;;  %1503 = vtanh.f32 %v594_v28 }
 0xebb   :  { %1505 = vtanh.f32 %v822_v32  ;;  %v839_v55 = vor.u32 1.1754944e-38, %v838_v51  ;;  %vm837_vm8 = vcmp.eq.f32.partialorder %v836_v53, 8.507059e+37  ;;  %v771_v51 = vpop.f32.mrf.mxu3 }
 0xebc   :  { %v602_v40 = vmul.f32 %v1500_v17, %v601_v38 }
 0xebe   :  { %v603_v42 = vadd.f32 %v1500_v17, %v602_v40 }
 0xebf   :  { %v1502_v43 = vpop.eup %1501 }
 0xec0   :  { %v607_v45 = vsel %vm606_vm2, %v1500_v17, %v603_v42  ;;  %v828_v46 = vmul.f32 %v1502_v43, %v826_v36  ;;  %v1504_v47 = vpop.eup %1503  ;;  %vm833_vm4 = vweird.f32 %v1502_v43 }
 0xec1   :  { %v612_v48 = vsel %vm609_vm3, %v611_v44, %v607_v45  ;;  %vm834_vm7 = vmor %vm832_vm6, %vm833_vm4  ;;  %v1506_v57 = vpop.eup %1505 }
 0xec2   :  { %v615_v49 = vsel %vm1736_vm5, %v1504_v47, %v612_v48  ;;  %v829_v50 = vsub.f32 1.0, %v828_v46 }
 0xec3   :  { %618 = vrot.lane.b32.xlu0 %v615_v49, %s1606_s17  ;;  %v616_v0 = vmul.f32 %v615_v49, %v1848_v11 }
 0xec4   :  { %v830_v52 = vmul.f32 %v1502_v43, %v829_v50 }
 0xec6   :  { %v831_v54 = vadd.f32 %v1502_v43, %v830_v52  ;;  %v772_v52 = vadd.f32 %v1898_v29, %v771_v51 }
 0xec8   :  { %v835_v56 = vsel %vm834_vm7, %v1502_v43, %v831_v54 }
 0xec9   :  { %v840_v58 = vsel %vm837_vm8, %v839_v55, %v835_v56 }
 0xeca   :  { %v843_v59 = vsel %vm1736_vm5, %v1506_v57, %v840_v58 }
 0xecb   :  { %846 = vrot.lane.b32.xlu1 %v843_v59, %s1606_s17  ;;  %v844_v3 = vmul.f32 0.0, %v843_v59 }
 0xf35   :  { %v619_v60 = vpop.permute.xlu0 %618 }
 0xf36   :  { %v621_v61 = vmul.f32 %v619_v60, %v615_v49 }
 0xf38   :  { %623 = vrot.lane.b32.xlu2 %v621_v61, %s1607_s18 }
 0xf3d   :  { %v847_v62 = vpop.permute.xlu1 %846 }
 0xf3e   :  { %v849_v63 = vmul.f32 %v847_v62, %v843_v59 }
 0xf40   :  { %851 = vrot.lane.b32.xlu0 %v849_v63, %s1607_s18 }
 0xf92   :  { %v624_v1 = vpop.permute.xlu2 %623 }
 0xf93   :  { %v1910_v16 = vadd.f32 %v624_v1, %v616_v0 }
 0xf95   :  { %1507 = vtanh.f32 %v1910_v16 }
 0xf9b   :  { %v1508_v2 = vpop.eup %1507 }
 0xf9c   :  { %629 = vrot.lane.b32.xlu1 %v1508_v2, %s1606_s17 }
 0xfb2   :  { %v852_v4 = vpop.permute.xlu0 %851 }
 0xfb3   :  { %v854_v5 = vadd.f32 %v852_v4, %v844_v3 }
 0xfb5   :  { %1509 = vtanh.f32 %v854_v5 }
 0xfbb   :  { %v1510_v6 = vpop.eup %1509 }
 0xfbc   :  { %857 = vrot.lane.b32.xlu2 %v1510_v6, %s1606_s17 }
0x100e   :  { %v630_v9 = vpop.permute.xlu1 %629 }
0x100f   :  { %v632_v10 = vmul.f32 %v630_v9, %v615_v49 }
0x1011   :  { %634 = vrot.lane.b32.xlu0 %v632_v10, %s1607_s18 }
0x1016   :  { %v858_v11 = vpop.permute.xlu2 %857 }
0x1017   :  { %v860_v12 = vmul.f32 %v858_v11, %v843_v59 }
0x1019   :  { %863 = vrot.lane.b32.xlu1 %v860_v12, %s1607_s18 }
0x1083   :  { %v635_v13 = vpop.permute.xlu0 %634 }
0x1084   :  { %638 = vst.msk [vmem:[#allocation3 + $0x30] sm:$0xff] %vm157_vm9, %v635_v13  ;;  %1410 = vmatmul.msk.f32.vlgmr.msra.gmra.mxu2 %vm157_vm9, %v635_v13 }
0x1085   :  { %1009 = vmatpush.msra.mxu2 %v1856_v19 }
0x1087   :  { %1010 = vmatpush.msra.mxu2 %v1861_v20 }
0x1089   :  { %1011 = vmatpush.msra.mxu2 %v1868_v21 }
0x108b   :  { %v864_v14 = vpop.permute.xlu1 %863  ;;  %v714_v23 = vld [vmem:[#allocation3 + $0x30] sm:$0xff]  ;;  %1012 = vmatpush.msra.mxu2 %v1875_v22 }
0x108c   :  { %1418 = vmatmul.msk.f32.gmra.mxu3 %vm157_vm9, %v714_v23  ;;  %1421 = vmatmul.msk.f32.vlgmr.msrb.gmra.mxu2 %vm157_vm9, %v864_v14 }
0x108d   :  { %1139 = vmatpush.msrb.mxu2 %v1856_v19 }
0x108f   :  { %1140 = vmatpush.msrb.mxu2 %v1861_v20 }
0x1091   :  { %1141 = vmatpush.msrb.mxu2 %v1868_v21 }
0x1093   :  { %1142 = vmatpush.msrb.mxu2 %v1875_v22 }
0x1107   :  { %v1929_v25 = vpop.f32.mrf.mxu2 }
0x110f   :  { %v884_v28 = vpop.f32.mrf.mxu2 }
0x1110   :  { %v887_v30 = vadd.f32 %v884_v28, %v769_v27  ;;  %v774_v27 = vpop.f32.mrf.mxu3 }
0x1111   :  { %v775_v28 = vadd.f32 %v1898_v29, %v774_v27 }
0x1112   :  { %v1422_v7 = vmul.f32 -1.442695, %v887_v30 }
0x1114   :  { %1511 = vpow2.f32 %v1422_v7 }
0x111a   :  { %v1512_v15 = vpop.eup %1511 }
0x111b   :  { %v891_v31 = vadd.f32 1.0, %v1512_v15 }
0x111d   :  { %1513 = vrcp.f32 %v891_v31  ;;  %v903_v35 = vand.u32 2147483648, %v891_v31  ;;  %v901_v17 = vand.u32 2147483647, %v891_v31  ;;  %vm897_vm11 = vweird.f32 %v891_v31 }
0x111e   :  { %1515 = vtanh.f32 %v887_v30 }
0x111f   :  { %v904_v37 = vor.u32 1.1754944e-38, %v903_v35  ;;  %vm902_vm13 = vcmp.eq.f32.partialorder %v901_v17, 8.507059e+37 }
0x1123   :  { %v1514_v32 = vpop.eup %1513 }
0x1124   :  { %v893_v33 = vmul.f32 %v1514_v32, %v891_v31  ;;  %vm898_vm10 = vweird.f32 %v1514_v32  ;;  %v1516_v39 = vpop.eup %1515 }
0x1125   :  { %vm899_vm12 = vmor %vm897_vm11, %vm898_vm10 }
0x1126   :  { %v894_v34 = vsub.f32 1.0, %v893_v33 }
0x1128   :  { %v895_v8 = vmul.f32 %v1514_v32, %v894_v34 }
0x112a   :  { %v896_v36 = vadd.f32 %v1514_v32, %v895_v8 }
0x112c   :  { %v900_v38 = vsel %vm899_vm12, %v1514_v32, %v896_v36 }
0x112d   :  { %v905_v40 = vsel %vm902_vm13, %v904_v37, %v900_v38 }
0x112e   :  { %v908_v41 = vsel %vm1736_vm5, %v1516_v39, %v905_v40 }
0x112f   :  { %911 = vrot.lane.b32.xlu2 %v908_v41, %s1606_s17  ;;  %v909_v44 = vmul.f32 %v908_v41, %v854_v5 }
0x1189   :  { %v912_v42 = vpop.permute.xlu2 %911 }
0x118a   :  { %v914_v43 = vmul.f32 %v912_v42, %v908_v41 }
0x118c   :  { %916 = vrot.lane.b32.xlu0 %v914_v43, %s1607_s18 }
0x11fe   :  { %v917_v45 = vpop.permute.xlu0 %916 }
0x11ff   :  { %v919_v46 = vadd.f32 %v917_v45, %v909_v44 }
0x1201   :  { %1517 = vtanh.f32 %v919_v46 }
0x1207   :  { %v1518_v47 = vpop.eup %1517 }
0x1208   :  { %922 = vrot.lane.b32.xlu1 %v1518_v47, %s1606_s17 }
0x127a   :  { %v923_v48 = vpop.permute.xlu1 %922 }
0x127b   :  { %v925_v49 = vmul.f32 %v923_v48, %v908_v41  ;;  %v777_v48 = vpop.f32.mrf.mxu3 }
0x127d   :  { %928 = vrot.lane.b32.xlu2 %v925_v49, %s1607_s18  ;;  %v778_v49 = vadd.f32 %v1898_v29, %v777_v48 }
0x12d7   :  { %v929_v50 = vpop.permute.xlu2 %928 }
0x12d8   :  { %1423 = vmatmul.msk.f32.vlgmr.msra.gmra.mxu1 %vm157_vm9, %v929_v50 }
0x12d9   :  { %1204 = vmatpush.msra.mxu1 %v1856_v19 }
0x12db   :  { %1205 = vmatpush.msra.mxu1 %v1861_v20 }
0x12dd   :  { %1206 = vmatpush.msra.mxu1 %v1868_v21 }
0x12df   :  { %1207 = vmatpush.msra.mxu1 %v1875_v22 }
0x1355   :  { %v949_v53 = vpop.f32.mrf.mxu1 }
0x1356   :  { %v952_v54 = vadd.f32 %v949_v53, %v772_v52 }
0x1358   :  { %v1424_v55 = vmul.f32 -1.442695, %v952_v54 }
0x135a   :  { %1519 = vpow2.f32 %v1424_v55 }
0x1360   :  { %v1520_v56 = vpop.eup %1519 }
0x1361   :  { %v956_v57 = vadd.f32 1.0, %v1520_v56 }
0x1363   :  { %1521 = vrcp.f32 %v956_v57  ;;  %v968_v61 = vand.u32 2147483648, %v956_v57  ;;  %v966_v63 = vand.u32 2147483647, %v956_v57  ;;  %vm962_vm15 = vweird.f32 %v956_v57 }
0x1364   :  { %1523 = vtanh.f32 %v952_v54 }
0x1365   :  { %v969_v1 = vor.u32 1.1754944e-38, %v968_v61  ;;  %vm967_vm1 = vcmp.eq.f32.partialorder %v966_v63, 8.507059e+37 }
0x1369   :  { %v1522_v58 = vpop.eup %1521 }
0x136a   :  { %v958_v59 = vmul.f32 %v1522_v58, %v956_v57  ;;  %vm963_vm14 = vweird.f32 %v1522_v58  ;;  %v1524_v3 = vpop.eup %1523 }
0x136b   :  { %vm964_vm0 = vmor %vm962_vm15, %vm963_vm14 }
0x136c   :  { %v959_v60 = vsub.f32 1.0, %v958_v59 }
0x136e   :  { %v960_v62 = vmul.f32 %v1522_v58, %v959_v60 }
0x1370   :  { %v961_v0 = vadd.f32 %v1522_v58, %v960_v62 }
0x1372   :  { %v965_v2 = vsel %vm964_vm0, %v1522_v58, %v961_v0 }
0x1373   :  { %v970_v4 = vsel %vm967_vm1, %v969_v1, %v965_v2 }
0x1374   :  { %v973_v5 = vsel %vm1736_vm5, %v1524_v3, %v970_v4 }
0x1375   :  { %976 = vrot.lane.b32.xlu0 %v973_v5, %s1606_s17  ;;  %v974_v10 = vmul.f32 %v973_v5, %v919_v46 }
0x13e7   :  { %v977_v6 = vpop.permute.xlu0 %976 }
0x13e8   :  { %v979_v9 = vmul.f32 %v977_v6, %v973_v5 }
0x13ea   :  { %981 = vrot.lane.b32.xlu1 %v979_v9, %s1607_s18 }
0x145c   :  { %v982_v11 = vpop.permute.xlu1 %981 }
0x145d   :  { %v984_v12 = vadd.f32 %v982_v11, %v974_v10 }
0x145f   :  { %1525 = vtanh.f32 %v984_v12 }
0x1465   :  { %v1526_v13 = vpop.eup %1525 }
0x1466   :  { %987 = vrot.lane.b32.xlu2 %v1526_v13, %s1606_s17 }
0x14c0   :  { %v988_v14 = vpop.permute.xlu2 %987 }
0x14c1   :  { %v990_v23 = vmul.f32 %v988_v14, %v973_v5  ;;  %v780_v14 = vpop.f32.mrf.mxu3 }
0x14c3   :  { %993 = vrot.lane.b32.xlu0 %v990_v23, %s1607_s18  ;;  %v781_v23 = vadd.f32 %v1898_v29, %v780_v14 }
0x1535   :  { %v994_v26 = vpop.permute.xlu0 %993 }
0x1536   :  { %1425 = vmatmul.msk.f32.vlgmr.msra.gmra.mxu2 %vm157_vm9, %v994_v26 }
0x1537   :  { %1269 = vmatpush.msra.mxu2 %v1856_v19 }
0x1539   :  { %1270 = vmatpush.msra.mxu2 %v1861_v20 }
0x153b   :  { %1271 = vmatpush.msra.mxu2 %v1868_v21 }
0x153d   :  { %1272 = vmatpush.msra.mxu2 %v1875_v22 }
0x15b9   :  { %v1014_v30 = vpop.f32.mrf.mxu2 }
0x15ba   :  { %v1017_v7 = vadd.f32 %v1014_v30, %v775_v28 }
0x15bc   :  { %v1426_v15 = vmul.f32 -1.442695, %v1017_v7 }
0x15be   :  { %1527 = vpow2.f32 %v1426_v15 }
0x15c4   :  { %v1528_v31 = vpop.eup %1527 }
0x15c5   :  { %v1021_v32 = vadd.f32 1.0, %v1528_v31 }
0x15c7   :  { %1529 = vrcp.f32 %v1021_v32  ;;  %v1033_v19 = vand.u32 2147483648, %v1021_v32  ;;  %v1031_v21 = vand.u32 2147483647, %v1021_v32  ;;  %vm1027_vm3 = vweird.f32 %v1021_v32 }
0x15c8   :  { %1531 = vtanh.f32 %v1017_v7 }
0x15c9   :  { %v1034_v22 = vor.u32 1.1754944e-38, %v1033_v19  ;;  %vm1032_vm6 = vcmp.eq.f32.partialorder %v1031_v21, 8.507059e+37 }
0x15cd   :  { %v1530_v33 = vpop.eup %1529 }
0x15ce   :  { %v1023_v34 = vmul.f32 %v1530_v33, %v1021_v32  ;;  %vm1028_vm2 = vweird.f32 %v1530_v33  ;;  %v1532_v36 = vpop.eup %1531 }
0x15cf   :  { %vm1029_vm4 = vmor %vm1027_vm3, %vm1028_vm2 }
0x15d0   :  { %v1024_v35 = vsub.f32 1.0, %v1023_v34 }
0x15d2   :  { %v1025_v20 = vmul.f32 %v1530_v33, %v1024_v35 }
0x15d4   :  { %v1026_v8 = vadd.f32 %v1530_v33, %v1025_v20 }
0x15d6   :  { %v1030_v17 = vsel %vm1029_vm4, %v1530_v33, %v1026_v8 }
0x15d7   :  { %v1035_v37 = vsel %vm1032_vm6, %v1034_v22, %v1030_v17 }
0x15d8   :  { %v1038_v38 = vsel %vm1736_vm5, %v1532_v36, %v1035_v37  ;;  %v1575_v36 = vld [vmem:[%s2035_s3] ss:$0 sm:$0xff] }
0x15d9   :  { %1041 = vrot.lane.b32.xlu1 %v1038_v38, %s1606_s17  ;;  %v1039_v41 = vmul.f32 %v1038_v38, %v984_v12  ;;  %v142_v37 = vadd.f32 %v1575_v36, %v1795_v18 }
0x164b   :  { %v1042_v39 = vpop.permute.xlu1 %1041 }
0x164c   :  { %v1044_v40 = vmul.f32 %v1042_v39, %v1038_v38 }
0x164e   :  { %1046 = vrot.lane.b32.xlu2 %v1044_v40, %s1607_s18 }
0x16a8   :  { %v1047_v42 = vpop.permute.xlu2 %1046 }
0x16a9   :  { %v1049_v43 = vadd.f32 %v1047_v42, %v1039_v41 }
0x16ab   :  { %1533 = vtanh.f32 %v1049_v43 }
0x16b1   :  { %v1534_v44 = vpop.eup %1533 }
0x16b2   :  { %1052 = vrot.lane.b32.xlu0 %v1534_v44, %s1606_s17 }
0x1724   :  { %v1053_v45 = vpop.permute.xlu0 %1052 }
0x1725   :  { %v1055_v46 = vmul.f32 %v1053_v45, %v1038_v38  ;;  %v663_v38 = vadd.f32 %v1929_v25, %v142_v37 }
0x1727   :  { %1058 = vrot.lane.b32.xlu1 %v1055_v46, %s1607_s18  ;;  %v1411_v39 = vmul.f32 -1.442695, %v663_v38 }
0x1799   :  { %v1059_v47 = vpop.permute.xlu1 %1058 }
0x179a   :  { %1427 = vmatmul.msk.f32.vlgmr.msrb.gmra.mxu1 %vm157_vm9, %v1059_v47 }
0x1817   :  { %v1079_v50 = vpop.f32.mrf.mxu1 }
0x1818   :  { %v1082_v51 = vadd.f32 %v1079_v50, %v778_v49 }
0x181a   :  { %v1428_v52 = vmul.f32 -1.442695, %v1082_v51 }
0x181c   :  { %1535 = vpow2.f32 %v1428_v52 }
0x1822   :  { %v1536_v53 = vpop.eup %1535 }
0x1823   :  { %v1086_v54 = vadd.f32 1.0, %v1536_v53 }
0x1825   :  { %1537 = vrcp.f32 %v1086_v54  ;;  %v1098_v58 = vand.u32 2147483648, %v1086_v54  ;;  %v1096_v60 = vand.u32 2147483647, %v1086_v54  ;;  %vm1092_vm8 = vweird.f32 %v1086_v54 }
0x1826   :  { %1539 = vtanh.f32 %v1082_v51 }
0x1827   :  { %v1099_v62 = vor.u32 1.1754944e-38, %v1098_v58  ;;  %vm1097_vm11 = vcmp.eq.f32.partialorder %v1096_v60, 8.507059e+37 }
0x182b   :  { %v1538_v55 = vpop.eup %1537 }
0x182c   :  { %v1088_v56 = vmul.f32 %v1538_v55, %v1086_v54  ;;  %vm1093_vm7 = vweird.f32 %v1538_v55  ;;  %v1540_v0 = vpop.eup %1539 }
0x182d   :  { %vm1094_vm10 = vmor %vm1092_vm8, %vm1093_vm7 }
0x182e   :  { %v1089_v57 = vsub.f32 1.0, %v1088_v56 }
0x1830   :  { %v1090_v59 = vmul.f32 %v1538_v55, %v1089_v57 }
0x1832   :  { %v1091_v61 = vadd.f32 %v1538_v55, %v1090_v59 }
0x1834   :  { %v1095_v63 = vsel %vm1094_vm10, %v1538_v55, %v1091_v61 }
0x1835   :  { %v1100_v1 = vsel %vm1097_vm11, %v1099_v62, %v1095_v63  ;;  %v783_v63 = vpop.f32.mrf.mxu3 }
0x1836   :  { %v1103_v2 = vsel %vm1736_vm5, %v1540_v0, %v1100_v1  ;;  %v784_v0 = vadd.f32 %v1898_v29, %v783_v63  ;;  %v1317_v63 = vld [vmem:[#allocation5 + $0x8] sm:$0xff] }
0x1837   :  { %1106 = vrot.lane.b32.xlu2 %v1103_v2, %s1606_s17  ;;  %v1104_v5 = vmul.f32 %v1103_v2, %v1049_v43 }
0x1891   :  { %v1107_v3 = vpop.permute.xlu2 %1106 }
0x1892   :  { %v1109_v4 = vmul.f32 %v1107_v3, %v1103_v2 }
0x1894   :  { %1111 = vrot.lane.b32.xlu0 %v1109_v4, %s1607_s18 }
0x1906   :  { %v1112_v6 = vpop.permute.xlu0 %1111 }
0x1907   :  { %v1968_v9 = vadd.f32 %v1112_v6, %v1104_v5 }
0x1909   :  { %1541 = vtanh.f32 %v1968_v9 }
0x190f   :  { %v1542_v10 = vpop.eup %1541 }
0x1910   :  { %1117 = vrot.lane.b32.xlu1 %v1542_v10, %s1606_s17 }
0x1982   :  { %v1118_v11 = vpop.permute.xlu1 %1117 }
0x1983   :  { %v1120_v12 = vmul.f32 %v1118_v11, %v1103_v2 }
0x1985   :  { %1123 = vrot.lane.b32.xlu2 %v1120_v12, %s1607_s18 }
0x19df   :  { %v1124_v13 = vpop.permute.xlu2 %1123 }
0x19e0   :  { %1429 = vmatmul.msk.f32.vlgmr.msrb.gmra.mxu2 %vm157_vm9, %v1124_v13 }
0x1a63   :  { %v1144_v26 = vpop.f32.mrf.mxu2 }
0x1a64   :  { %v1147_v27 = vadd.f32 %v1144_v26, %v781_v23 }
0x1a66   :  { %v1430_v28 = vmul.f32 -1.442695, %v1147_v27 }
0x1a68   :  { %1543 = vpow2.f32 %v1430_v28 }
0x1a6e   :  { %v1544_v30 = vpop.eup %1543 }
0x1a6f   :  { %v1151_v7 = vadd.f32 1.0, %v1544_v30 }
0x1a71   :  { %1545 = vrcp.f32 %v1151_v7  ;;  %v1163_v33 = vand.u32 2147483648, %v1151_v7  ;;  %v1161_v35 = vand.u32 2147483647, %v1151_v7  ;;  %vm1157_vm13 = vweird.f32 %v1151_v7 }
0x1a72   :  { %1547 = vtanh.f32 %v1147_v27 }
0x1a73   :  { %v1164_v20 = vor.u32 1.1754944e-38, %v1163_v33  ;;  %vm1162_vm15 = vcmp.eq.f32.partialorder %v1161_v35, 8.507059e+37  ;;  %1549 = vpow2.f32 %v1411_v39 }
0x1a77   :  { %v1546_v15 = vpop.eup %1545 }
0x1a78   :  { %v1153_v31 = vmul.f32 %v1546_v15, %v1151_v7  ;;  %vm1158_vm12 = vweird.f32 %v1546_v15  ;;  %v1548_v8 = vpop.eup %1547 }
0x1a79   :  { %vm1159_vm14 = vmor %vm1157_vm13, %vm1158_vm12  ;;  %v1550_v40 = vpop.eup %1549 }
0x1a7a   :  { %v1154_v32 = vsub.f32 1.0, %v1153_v31  ;;  %v667_v41 = vadd.f32 1.0, %v1550_v40 }
0x1a7c   :  { %v1155_v34 = vmul.f32 %v1546_v15, %v1154_v32  ;;  %1551 = vrcp.f32 %v667_v41  ;;  %v679_v49 = vand.u32 2147483648, %v667_v41  ;;  %vm673_vm1 = vweird.f32 %v667_v41 }
0x1a7d   :  { %v677_v50 = vand.u32 2147483647, %v667_v41  ;;  %1553 = vtanh.f32 %v663_v38 }
0x1a7e   :  { %v1156_v19 = vadd.f32 %v1546_v15, %v1155_v34  ;;  %v680_v25 = vor.u32 1.1754944e-38, %v679_v49 }
0x1a7f   :  { %vm678_vm3 = vcmp.eq.f32.partialorder %v677_v50, 8.507059e+37 }
0x1a80   :  { %v1160_v21 = vsel %vm1159_vm14, %v1546_v15, %v1156_v19 }
0x1a81   :  { %v1165_v22 = vsel %vm1162_vm15, %v1164_v20, %v1160_v21 }
0x1a82   :  { %v1168_v17 = vsel %vm1736_vm5, %v1548_v8, %v1165_v22  ;;  %v1552_v42 = vpop.eup %1551 }
0x1a83   :  { %1171 = vrot.lane.b32.xlu0 %v1168_v17, %s1606_s17  ;;  %v669_v43 = vmul.f32 %v1552_v42, %v667_v41  ;;  %vm674_vm0 = vweird.f32 %v1552_v42  ;;  %v1554_v52 = vpop.eup %1553  ;;  %v1169_v54 = vmul.f32 %v1168_v17, %v1968_v9 }
0x1a84   :  { %vm675_vm2 = vmor %vm673_vm1, %vm674_vm0 }
0x1a85   :  { %v670_v44 = vsub.f32 1.0, %v669_v43 }
0x1a87   :  { %v671_v45 = vmul.f32 %v1552_v42, %v670_v44 }
0x1a89   :  { %v672_v47 = vadd.f32 %v1552_v42, %v671_v45 }
0x1a8b   :  { %v676_v18 = vsel %vm675_vm2, %v1552_v42, %v672_v47 }
0x1a8c   :  { %v681_v51 = vsel %vm678_vm3, %v680_v25, %v676_v18 }
0x1a8d   :  { %v684_v53 = vsel %vm1736_vm5, %v1554_v52, %v681_v51 }
0x1a8e   :  { %v685_v23 = vmul.f32 %v684_v53, %v1910_v16 }
0x1af5   :  { %v1172_v46 = vpop.permute.xlu0 %1171 }
0x1af6   :  { %v1174_v48 = vmul.f32 %v1172_v46, %v1168_v17 }
0x1af8   :  { %1176 = vrot.lane.b32.xlu1 %v1174_v48, %s1607_s18 }
0x1b00   :  { %687 = vrot.lane.b32.xlu1 %v684_v53, %s1606_s17 }
0x1b6a   :  { %v1177_v55 = vpop.permute.xlu1 %1176 }
0x1b6b   :  { %v1179_v56 = vadd.f32 %v1177_v55, %v1169_v54 }
0x1b6d   :  { %1555 = vtanh.f32 %v1179_v56 }
0x1b72   :  { %v688_v60 = vpop.permute.xlu1 %687 }
0x1b73   :  { %v1556_v57 = vpop.eup %1555  ;;  %v690_v61 = vmul.f32 %v688_v60, %v684_v53 }
0x1b74   :  { %1182 = vrot.lane.b32.xlu2 %v1556_v57, %s1606_s17 }
0x1bce   :  { %v1183_v58 = vpop.permute.xlu2 %1182 }
0x1bcf   :  { %v1185_v59 = vmul.f32 %v1183_v58, %v1168_v17 }
0x1bd1   :  { %1188 = vrot.lane.b32.xlu0 %v1185_v59, %s1607_s18 }
0x1bd9   :  { %692 = vrot.lane.b32.xlu0 %v690_v61, %s1607_s18  ;;  %v1319_v61 = vld [vmem:[#allocation5 + $0x18] sm:$0xff] }
0x1bda   :  { %1341 = vmatpush.msrb.mxu1 %v1319_v61 }
0x1c43   :  { %v1189_v62 = vpop.permute.xlu0 %1188 }
0x1c44   :  { %1431 = vmatmul.msk.f32.vlgmr.msra.gmra.mxu1 %vm157_vm9, %v1189_v62  ;;  %v1318_v62 = vld [vmem:[#allocation5 + $0x10] sm:$0xff] }
0x1c45   :  { %1342 = vmatpush.msrb.mxu1 %v1318_v62 }
0x1c47   :  { %1343 = vmatpush.msrb.mxu1 %v1317_v63 }
0x1c49   :  { %1344 = vmatpush.msrb.mxu1 %v1316_v24 }
0x1c4b   :  { %v693_v14 = vpop.permute.xlu0 %692 }
0x1c4c   :  { %v695_v28 = vadd.f32 %v693_v14, %v685_v23 }
0x1cc1   :  { %v1209_v1 = vpop.f32.mrf.mxu1 }
0x1cc2   :  { %v1212_v2 = vadd.f32 %v1209_v1, %v784_v0 }
0x1cc4   :  { %v1432_v3 = vmul.f32 -1.442695, %v1212_v2 }
0x1cc6   :  { %1557 = vpow2.f32 %v1432_v3  ;;  %v1352_v3 = vld [vmem:[%s2041_s9 + $0x10] sm:$0xff] }
0x1ccc   :  { %v1558_v4 = vpop.eup %1557 }
0x1ccd   :  { %v1216_v5 = vadd.f32 1.0, %v1558_v4 }
0x1ccf   :  { %1559 = vrcp.f32 %v1216_v5  ;;  %v1228_v11 = vand.u32 2147483648, %v1216_v5  ;;  %v1226_v13 = vand.u32 2147483647, %v1216_v5  ;;  %vm1222_vm6 = vweird.f32 %v1216_v5 }
0x1cd0   :  { %1561 = vtanh.f32 %v1212_v2  ;;  %v1353_v2 = vld [vmem:[%s2041_s9 + $0x18] sm:$0xff] }
0x1cd1   :  { %v1229_v27 = vor.u32 1.1754944e-38, %v1228_v11  ;;  %vm1227_vm8 = vcmp.eq.f32.partialorder %v1226_v13, 8.507059e+37  ;;  %1563 = vtanh.f32 %v695_v28  ;;  %1373 = vmatpush.msrb.mxu2 %v1353_v2  ;;  %v1446_v13 = vld [vmem:[#allocation4] ss:$0 sm:$0xff] }
0x1cd3   :  { %1374 = vmatpush.msrb.mxu2 %v1352_v3 }
0x1cd5   :  { %v1560_v6 = vpop.eup %1559 }
0x1cd6   :  { %v1218_v9 = vmul.f32 %v1560_v6, %v1216_v5  ;;  %vm1223_vm4 = vweird.f32 %v1560_v6  ;;  %v1562_v7 = vpop.eup %1561  ;;  %v1351_v5 = vld [vmem:[%s2041_s9 + $0x8] sm:$0xff] }
0x1cd7   :  { %vm1224_vm7 = vmor %vm1222_vm6, %vm1223_vm4  ;;  %v1564_v32 = vpop.eup %1563  ;;  %1375 = vmatpush.msrb.mxu2 %v1351_v5 }
0x1cd8   :  { %v1219_v10 = vsub.f32 1.0, %v1218_v9  ;;  %v1445_v9 = vld [vmem:[%s2040_s8] ss:$0 sm:$0xff] }
0x1cda   :  { %v1220_v12 = vmul.f32 %v1560_v6, %v1219_v10 }
0x1cdc   :  { %v1221_v26 = vadd.f32 %v1560_v6, %v1220_v12 }
0x1cde   :  { %v1225_v30 = vsel %vm1224_vm7, %v1560_v6, %v1221_v26  ;;  %v1350_v6 = vld [vmem:[%s2041_s9] sm:$0xff] }
0x1cdf   :  { %v1230_v15 = vsel %vm1227_vm8, %v1229_v27, %v1225_v30  ;;  %1376 = vmatpush.msrb.mxu2 %v1350_v6 }
0x1ce0   :  { %v1233_v31 = vsel %vm1736_vm5, %v1562_v7, %v1230_v15 }
0x1ce1   :  { %1236 = vrot.lane.b32.xlu2 %v1233_v31, %s1606_s17  ;;  %v1234_v19 = vmul.f32 %v1233_v31, %v1179_v56 }
0x1ce9   :  { %698 = vrot.lane.b32.xlu2 %v1564_v32, %s1606_s17 }
0x1d3b   :  { %v1237_v33 = vpop.permute.xlu2 %1236 }
0x1d3c   :  { %v1239_v16 = vmul.f32 %v1237_v33, %v1233_v31 }
0x1d3e   :  { %1241 = vrot.lane.b32.xlu1 %v1239_v16, %s1607_s18 }
0x1d43   :  { %v699_v34 = vpop.permute.xlu2 %698 }
0x1d44   :  { %v701_v35 = vmul.f32 %v699_v34, %v684_v53 }
0x1d46   :  { %703 = vrot.lane.b32.xlu1 %v701_v35, %s1607_s18 }
0x1db0   :  { %v1242_v20 = vpop.permute.xlu1 %1241 }
0x1db1   :  { %v1244_v21 = vadd.f32 %v1242_v20, %v1234_v19 }
0x1db3   :  { %1565 = vtanh.f32 %v1244_v21 }
0x1db8   :  { %v704_v8 = vpop.permute.xlu1 %703 }
0x1db9   :  { %v1566_v22 = vpop.eup %1565  ;;  %707 = vst.msk [vmem:[#allocation3 + $0x38] sm:$0xff] %vm157_vm9, %v704_v8 }
0x1dba   :  { %1247 = vrot.lane.b32.xlu0 %v1566_v22, %s1606_s17 }
0x1dc0   :  { %v715_v17 = vld [vmem:[#allocation3 + $0x38] sm:$0xff] }
0x1dc1   :  { %1419 = vmatmul.msk.f32.gmra.mxu3 %vm157_vm9, %v715_v17 }
0x1e2c   :  { %v1248_v36 = vpop.permute.xlu0 %1247 }
0x1e2d   :  { %v1250_v37 = vmul.f32 %v1248_v36, %v1233_v31 }
0x1e2f   :  { %1253 = vrot.lane.b32.xlu2 %v1250_v37, %s1607_s18 }
0x1e44   :  { %v786_v39 = vpop.f32.mrf.mxu3 }
0x1e45   :  { %v787_v40 = vadd.f32 %v1898_v29, %v786_v39 }
0x1e89   :  { %v1254_v38 = vpop.permute.xlu2 %1253 }
0x1e8a   :  { %1433 = vmatmul.msk.f32.vlgmr.msra.gmra.mxu2 %vm157_vm9, %v1254_v38 }
0x1f0d   :  { %v1274_v41 = vpop.f32.mrf.mxu2 }
0x1f0e   :  { %v1277_v42 = vadd.f32 %v1274_v41, %v787_v40 }
0x1f10   :  { %v1434_v43 = vmul.f32 -1.442695, %v1277_v42 }
0x1f12   :  { %1567 = vpow2.f32 %v1434_v43 }
0x1f18   :  { %v1568_v44 = vpop.eup %1567 }
0x1f19   :  { %v1281_v45 = vadd.f32 1.0, %v1568_v44 }
0x1f1b   :  { %1569 = vrcp.f32 %v1281_v45  ;;  %v1293_v49 = vand.u32 2147483648, %v1281_v45  ;;  %v1291_v18 = vand.u32 2147483647, %v1281_v45  ;;  %vm1287_vm11 = vweird.f32 %v1281_v45 }
0x1f1c   :  { %1571 = vtanh.f32 %v1277_v42 }
0x1f1d   :  { %v1294_v51 = vor.u32 1.1754944e-38, %v1293_v49  ;;  %vm1292_vm13 = vcmp.eq.f32.partialorder %v1291_v18, 8.507059e+37 }
0x1f21   :  { %v1570_v46 = vpop.eup %1569 }
0x1f22   :  { %v1283_v47 = vmul.f32 %v1570_v46, %v1281_v45  ;;  %vm1288_vm10 = vweird.f32 %v1570_v46  ;;  %v1572_v52 = vpop.eup %1571 }
0x1f23   :  { %vm1289_vm12 = vmor %vm1287_vm11, %vm1288_vm10 }
0x1f24   :  { %v1284_v48 = vsub.f32 1.0, %v1283_v47 }
0x1f26   :  { %v1285_v50 = vmul.f32 %v1570_v46, %v1284_v48 }
0x1f28   :  { %v1286_v25 = vadd.f32 %v1570_v46, %v1285_v50 }
0x1f2a   :  { %v1290_v29 = vsel %vm1289_vm12, %v1570_v46, %v1286_v25 }
0x1f2b   :  { %v1295_v53 = vsel %vm1292_vm13, %v1294_v51, %v1290_v29 }
0x1f2c   :  { %v1298_v54 = vsel %vm1736_vm5, %v1572_v52, %v1295_v53  ;;  %vm1381_vm5 = vcmask 7168  }
0x1f2d   :  { %1301 = vrot.lane.b32.xlu0 %v1298_v54, %s1606_s17  ;;  %v1299_v57 = vmul.f32 %v1298_v54, %v1244_v21 }
0x1f9f   :  { %v1302_v55 = vpop.permute.xlu0 %1301 }
0x1fa0   :  { %v1304_v56 = vmul.f32 %v1302_v55, %v1298_v54 }
0x1fa2   :  { %1306 = vrot.lane.b32.xlu1 %v1304_v56, %s1607_s18 }
0x2014   :  { %v1307_v58 = vpop.permute.xlu1 %1306 }
0x2015   :  { %v1309_v59 = vadd.f32 %v1307_v58, %v1299_v57 }
0x2017   :  { %1573 = vtanh.f32 %v1309_v59 }
0x201d   :  { %v1574_v60 = vpop.eup %1573 }
0x201e   :  { %1312 = vrot.lane.b32.xlu2 %v1574_v60, %s1606_s17 }
0x2078   :  { %v1313_v0 = vpop.permute.xlu2 %1312 }
0x2079   :  { %v1315_v1 = vmul.f32 %v1313_v0, %v1298_v54 }
0x207b   :  { %1325 = vrot.lane.b32.xlu0 %v1315_v1, %s1607_s18 }
0x20ed   :  { %v1326_v4 = vpop.permute.xlu0 %1325 }
0x20ee   :  { %1435 = vmatmul.msk.f32.vlgmr.msrb.gmra.mxu1 %vm157_vm9, %v1326_v4 }
0x216b   :  { %v1346_v10 = vpop.f32.mrf.mxu1 }
0x216c   :  { %v1347_v11 = vadd.f32 %v1445_v9, %v1346_v10 }
0x216e   :  { %v1349_v12 = vmax.f32 %v1347_v11, 0.0 }
0x2170   :  { %1436 = vmatmul.msk.f32.vlgmr.msrb.gmra.mxu2 %vm157_vm9, %v1349_v12 }
0x21f3   :  { %v1378_v14 = vpop.f32.mrf.mxu2 }
0x21f4   :  { %v1379_v23 = vadd.f32 %v1446_v13, %v1378_v14 }
0x21f6   :  { %1382 = vst.msk [vmem:[%s2043_s11] sm:$0xff] %vm1381_vm5, %v1379_v23 }
0x21f7   :  { %1387 = vsyncpa [#allocation6], 1 }

</bundles_post_ra>
